<compile_context>
chip_gen: v7x
topology: tpu7x:2x2x1
jax: 0.10.0
libtpu: 0.0.40
codegen_flags: <defaults>
</compile_context>

<pallas_src>
import functools

import jax
import jax.numpy as jnp
import numpy as np
from jax import lax
from jax.experimental import pallas as pl
from jax.experimental.pallas import tpu as pltpu


# ----------------------------------------------------------------------------
# Fused Block kernel (entire batch in one grid step).
# Layout: lane = w*Cp + c (Cp = 8), rows = n*H + h  (images stacked on rows).
#   x_ref : (N*H, W*Cp)   input slab (channels Cin..Cp-1 zero-padded)
#   w_ref : (64,  W*Cp)   packed weights/BN slab (see _pack_params)
#   o_ref : (N*H, W*Cp)   pooled + skip at every (row, column); the wrapper
#                         keeps even rows / even column-blocks.
# ----------------------------------------------------------------------------
def _block_kernel(x_ref, w_ref, o_ref, *, N, H, W, Cp, d1, d2, ds):
    L = W * Cp
    R = N * H
    nd1, nd2, nds = len(d1), len(d2), len(ds)

    # ---- static row offsets into the packed weight slab --------------------
    r = 0
    dwt1 = w_ref[r:r + 9]; r += 9            # depthwise taps, layer 1
    wv1 = w_ref[r:r + nd1]; r += nd1         # pointwise diag weights * BN1 scale
    sh1 = w_ref[r:r + 1]; r += 1             # BN1 shift
    dwt2 = w_ref[r:r + 9]; r += 9            # depthwise taps, layer 2
    wv2 = w_ref[r:r + nd2]; r += nd2         # pointwise diag weights * BN2 scale
    sh2 = w_ref[r:r + 1]; r += 1             # BN2 shift
    wvs = w_ref[r:r + nds]; r += nds         # skip diag weights * skipBN scale
    shs = w_ref[r:r + 1]; r += 1             # skipBN shift

    x = x_ref[...]                           # (R, L)

    # ---- precomputed masks (hoisted once) -----------------------------------
    lanes = lax.broadcasted_iota(jnp.int32, (R, L), 1)
    rows = lax.broadcasted_iota(jnp.int32, (R, L), 0) % H
    first_col = lanes < Cp                   # column-block w == 0
    last_col = lanes >= L - Cp               # column-block w == W-1
    first_row = rows == 0                    # first row of each image
    last_row = rows == H - 1                 # last row of each image

    def lroll(a, d):
        s = d % L
        if s == 0:
            return a
        return pltpu.roll(a, shift=s, axis=1)

    def col_variants(a):
        # (left neighbour column, center, right neighbour column), replicate edges
        left = jnp.where(first_col, a, lroll(a, Cp))
        right = jnp.where(last_col, a, lroll(a, -Cp))
        return left, a, right

    def from_above(a):
        # out[r] = a[r-1] within each image (replicate at the image's first row)
        sh = jnp.concatenate([a[:1], a[:-1]], axis=0)
        return jnp.where(first_row, a, sh)

    def from_below(a):
        # out[r] = a[r+1] within each image (replicate at the image's last row)
        sh = jnp.concatenate([a[1:], a[-1:]], axis=0)
        return jnp.where(last_row, a, sh)

    def depthwise3x3(a, dwt):
        acc = None
        row_v = (from_above(a), a, from_below(a))
        for dy in range(3):
            for dx, t in enumerate(col_variants(row_v[dy])):
                k = dy * 3 + dx
                term = t * dwt[k:k + 1]
                acc = term if acc is None else acc + term
        return acc

    def pointwise(a, wv, dlist, shift):
        # y[:, w*Cp+co] = sum_ci pw[ci,co]*scale[co] * a[:, w*Cp+ci] + shift[co]
        # decomposed over diagonals d = co - ci; wv rows are zero wherever
        # (co - d) is out of range, so cyclic wrap never contributes.
        acc = None
        for i, d in enumerate(dlist):
            term = wv[i:i + 1] * lroll(a, d)
            acc = term if acc is None else acc + term
        return acc + shift

    # ---- rep branch ---------------------------------------------------------
    h = jnp.maximum(x, 0.0)                   # ReLU
    h = depthwise3x3(h, dwt1)                 # depthwise 3x3 (replicate pad)
    h = pointwise(h, wv1, d1, sh1)            # pointwise 1x1 + BN1 (scale folded)

    h = jnp.maximum(h, 0.0)                   # ReLU
    h = depthwise3x3(h, dwt2)                 # depthwise 3x3
    h = pointwise(h, wv2, d2, sh2)            # pointwise 1x1 + BN2

    # ---- MaxPool2d(3, stride=2, pad=1), evaluated at every row/column -------
    # (replicate padding is equivalent to -inf padding for a max; the wrapper
    #  keeps even rows / even column-blocks -> stride-2 result)
    cl, cc, cr = col_variants(h)
    cm = jnp.maximum(jnp.maximum(cl, cc), cr)                 # column-window max
    pooled = jnp.maximum(jnp.maximum(from_above(cm), cm), from_below(cm))

    # ---- skip branch: 1x1 conv (+BN) at every position, fused residual add --
    sk = pointwise(x, wvs, ds, shs)

    o_ref[...] = pooled + sk


# ----------------------------------------------------------------------------
# Wrapper-side parameter packing (layout plumbing only, no activation compute)
# ----------------------------------------------------------------------------
def bn_fold(gamma, beta, mean, var, eps=1e-5):
    scale = gamma / jnp.sqrt(var + eps)
    shift = beta - mean * scale
    return scale, shift


def _dw_tile(dw9, cin, cp, w):
    dw = jnp.pad(dw9, ((0, 0), (0, cp - cin)))            # (9, cp)
    return jnp.tile(dw, (1, w))                           # (9, w*cp)


def _pw_diag(pw, cin, cp, w, scale):
    # pointwise weights (BN scale folded per out-channel), arranged per
    # diagonal d = co - ci, tiled over columns.
    cout = pw.shape[1]
    pw8 = jnp.zeros((cp, cp), jnp.float32).at[:cin, :cout].set(pw * scale[None, :])
    dlist = list(range(-(cin - 1), cout))
    co = jnp.arange(cp)
    vecs = []
    for d in dlist:
        ci = co - d
        w_d = jnp.where((ci >= 0) & (ci < cp),
                        pw8[jnp.clip(ci, 0, cp - 1), co], 0.0)
        vecs.append(jnp.tile(w_d, w))
    return jnp.stack(vecs, axis=0), tuple(dlist)          # (n_d, w*cp)


def _shift_row(shift, cp, w):
    s = jnp.pad(shift, (0, cp - shift.shape[0]))
    return jnp.tile(s, w)[None, :]                        # (1, w*cp)


def _pack_params(params, cin, cp, w):
    s1, b1 = bn_fold(*params["bn1"])
    s2, b2 = bn_fold(*params["bn2"])
    ss, bs = bn_fold(*params["skipbn"])

    dwt1 = _dw_tile(params["dw1"], cin, cp, w)
    wv1, d1 = _pw_diag(params["pw1"], cin, cp, w, s1)
    dwt2 = _dw_tile(params["dw2"], cp, cp, w)
    wv2, d2 = _pw_diag(params["pw2"], cp, cp, w, s2)
    wvs, ds = _pw_diag(params["skip_w"], cin, cp, w, ss)

    slab = jnp.concatenate([
        dwt1, wv1, _shift_row(b1, cp, w),
        dwt2, wv2, _shift_row(b2, cp, w),
        wvs, _shift_row(bs, cp, w),
    ], axis=0).astype(jnp.float32)
    pad = (-slab.shape[0]) % 8
    if pad:
        slab = jnp.pad(slab, ((0, pad), (0, 0)))
    return slab, d1, d2, ds


def block_forward(x_nchw, params):
    N, Cin, H, W = x_nchw.shape
    Cp = params["pw1"].shape[1]                           # out_filters (8)
    L = W * Cp

    # NCHW -> lane-dense slab (N*H, W*Cp); channels Cin..Cp-1 zero-padded.
    x = jnp.transpose(x_nchw, (0, 2, 3, 1)).astype(jnp.float32)
    x = jnp.pad(x, ((0, 0), (0, 0), (0, 0), (0, Cp - Cin)))
    x = x.reshape(N * H, L)

    slab, d1, d2, ds = _pack_params(params, Cin, Cp, W)

    kern = functools.partial(_block_kernel, N=N, H=H, W=W, Cp=Cp,
                             d1=d1, d2=d2, ds=ds)
    out = pl.pallas_call(
        kern,
        out_shape=jax.ShapeDtypeStruct((N * H, L), jnp.float32),
        grid=(1,),
        in_specs=[
            pl.BlockSpec((N * H, L), lambda i: (0, 0)),
            pl.BlockSpec(slab.shape, lambda i: (0, 0)),
        ],
        out_specs=pl.BlockSpec((N * H, L), lambda i: (0, 0)),
        compiler_params=pltpu.CompilerParams(
            dimension_semantics=("arbitrary",)),
    )(x, slab)

    # stride-2 selection (rows & column blocks) done here with cheap XLA ops
    out = out.reshape(N, H, W, Cp)[:, ::2, ::2, :]        # (N, Ho, Wo, Cp)
    return jnp.transpose(out, (0, 3, 1, 2))               # NCHW


# ----------------------------------------------------------------------------
# Pure-JAX reference (independent implementation via lax conv / reduce_window)
# ----------------------------------------------------------------------------
def reference_forward(x_nchw, params):
    hi = lax.Precision.HIGHEST
    x = jnp.transpose(x_nchw, (0, 2, 3, 1)).astype(jnp.float32)

    s1, b1 = bn_fold(*params["bn1"])
    s2, b2 = bn_fold(*params["bn2"])
    ss, bs = bn_fold(*params["skipbn"])

    def sep(h, dw9, pw, scale, shift):
        cin = dw9.shape[-1]
        h = jnp.maximum(h, 0.0)
        hp = jnp.pad(h, ((0, 0), (1, 1), (1, 1), (0, 0)), mode="edge")
        dw = dw9.reshape(3, 3, 1, cin)
        h = lax.conv_general_dilated(
            hp, dw, window_strides=(1, 1), padding="VALID",
            dimension_numbers=("NHWC", "HWIO", "NHWC"),
            feature_group_count=cin, precision=hi)
        h = jnp.einsum("nhwc,cd->nhwd", h, pw, precision=hi)
        return h * scale + shift

    h = sep(x, params["dw1"], params["pw1"], s1, b1)
    h = sep(h, params["dw2"], params["pw2"], s2, b2)
    pooled = lax.reduce_window(
        h, -jnp.inf, lax.max, (1, 3, 3, 1), (1, 2, 2, 1),
        ((0, 0), (1, 1), (1, 1), (0, 0)))
    skip = lax.conv_general_dilated(
        x, params["skip_w"].reshape(1, 1, *params["skip_w"].shape),
        window_strides=(2, 2), padding="VALID",
        dimension_numbers=("NHWC", "HWIO", "NHWC"), precision=hi)
    skip = skip * ss + bs
    return jnp.transpose(pooled + skip, (0, 3, 1, 2))


def make_params(key, cin, cout):
    ks = jax.random.split(key, 17)
    f32 = jnp.float32

    def bn(k0, k1, k2, k3, c):
        return (jax.random.uniform(k0, (c,), f32, 0.5, 1.5),   # gamma
                0.1 * jax.random.normal(k1, (c,), f32),        # beta
                0.1 * jax.random.normal(k2, (c,), f32),        # running_mean
                jax.random.uniform(k3, (c,), f32, 0.5, 1.5))   # running_var

    return {
        "dw1": 0.3 * jax.random.normal(ks[0], (9, cin), f32),
        "pw1": 0.3 * jax.random.normal(ks[1], (cin, cout), f32),
        "bn1": bn(ks[2], ks[3], ks[4], ks[5], cout),
        "dw2": 0.3 * jax.random.normal(ks[6], (9, cout), f32),
        "pw2": 0.3 * jax.random.normal(ks[7], (cout, cout), f32),
        "bn2": bn(ks[8], ks[9], ks[10], ks[11], cout),
        "skip_w": 0.3 * jax.random.normal(ks[12], (cin, cout), f32),
        "skipbn": bn(ks[13], ks[14], ks[15], ks[16], cout),
    }


if __name__ == "__main__":
    N, Cin, H, W = 2, 4, 16, 16
    Cout = 8

    key = jax.random.PRNGKey(0)
    kx, kp = jax.random.split(key)
    x = jax.random.normal(kx, (N, Cin, H, W), jnp.float32)   # NCHW like PyTorch
    params = make_params(kp, Cin, Cout)

    fwd = jax.jit(block_forward)
    out = jax.block_until_ready(fwd(x, params))

    ref = jax.block_until_ready(reference_forward(x, params))
    np.testing.assert_allclose(np.asarray(out), np.asarray(ref),
                               rtol=1e-4, atol=1e-4)
    assert out.shape == (N, Cout, H // 2, W // 2)

    print("KERNEL_OK")
</pallas_src>

<mosaic_0001>
module attributes {stable_mosaic.version = 11 : i64} {
  func.func @_block_kernel(%arg0: i32, %arg1: memref<32x128xf32, #tpu.memory_space<vmem>>, %arg2: memref<64x128xf32, #tpu.memory_space<vmem>>, %arg3: memref<32x128xf32, #tpu.memory_space<vmem>>) attributes {dimension_semantics = [#tpu.dimension_semantics<arbitrary>], iteration_bounds = array<i64: 1>, scalar_prefetch = 0 : i64, scratch_operands = 0 : i64, tpu.core_type = #tpu.core_type<tc>, window_params = [{pipeline_mode = #tpu.pipeline_mode<synchronous>, transform_indices = @transform_0, window_bounds = array<i64: 32, 128>}, {pipeline_mode = #tpu.pipeline_mode<synchronous>, transform_indices = @transform_1, window_bounds = array<i64: 64, 128>}, {pipeline_mode = #tpu.pipeline_mode<synchronous>, transform_indices = @transform_2, window_bounds = array<i64: 32, 128>}]} {
    %c0 = arith.constant 0 : index
    %c0_0 = arith.constant 0 : index
    %0 = vector.load %arg2[%c0, %c0_0] : memref<64x128xf32, #tpu.memory_space<vmem>>, vector<9x128xf32>
    %c9 = arith.constant 9 : index
    %c0_1 = arith.constant 0 : index
    %1 = vector.load %arg2[%c9, %c0_1] : memref<64x128xf32, #tpu.memory_space<vmem>>, vector<11x128xf32>
    %c20 = arith.constant 20 : index
    %c0_2 = arith.constant 0 : index
    %2 = vector.load %arg2[%c20, %c0_2] : memref<64x128xf32, #tpu.memory_space<vmem>>, vector<1x128xf32>
    %c21 = arith.constant 21 : index
    %c0_3 = arith.constant 0 : index
    %3 = vector.load %arg2[%c21, %c0_3] : memref<64x128xf32, #tpu.memory_space<vmem>>, vector<9x128xf32>
    %c30 = arith.constant 30 : index
    %c0_4 = arith.constant 0 : index
    %4 = vector.load %arg2[%c30, %c0_4] : memref<64x128xf32, #tpu.memory_space<vmem>>, vector<15x128xf32>
    %c45 = arith.constant 45 : index
    %c0_5 = arith.constant 0 : index
    %5 = vector.load %arg2[%c45, %c0_5] : memref<64x128xf32, #tpu.memory_space<vmem>>, vector<1x128xf32>
    %c46 = arith.constant 46 : index
    %c0_6 = arith.constant 0 : index
    %6 = vector.load %arg2[%c46, %c0_6] : memref<64x128xf32, #tpu.memory_space<vmem>>, vector<11x128xf32>
    %c57 = arith.constant 57 : index
    %c0_7 = arith.constant 0 : index
    %7 = vector.load %arg2[%c57, %c0_7] : memref<64x128xf32, #tpu.memory_space<vmem>>, vector<1x128xf32>
    %c0_8 = arith.constant 0 : index
    %c0_9 = arith.constant 0 : index
    %8 = vector.load %arg1[%c0_8, %c0_9] : memref<32x128xf32, #tpu.memory_space<vmem>>, vector<32x128xf32>
    %9 = tpu.iota {dimensions = array<i32: 1>} : vector<32x128xi32>
    %10 = tpu.iota {dimensions = array<i32: 0>} : vector<32x128xi32>
    %c16_i32 = arith.constant 16 : i32
    %c0_i32 = arith.constant 0 : i32
    %11 = arith.cmpi eq, %c16_i32, %c0_i32 : i32
    %c1_i32 = arith.constant 1 : i32
    %12 = arith.select %11, %c1_i32, %c16_i32 : i32
    %13 = vector.broadcast %12 : i32 to vector<32x128xi32>
    %14 = arith.remsi %10, %13 : vector<32x128xi32>
    %c0_i32_10 = arith.constant 0 : i32
    %15 = vector.broadcast %c0_i32_10 : i32 to vector<32x128xi32>
    %16 = arith.cmpi ne, %14, %15 : vector<32x128xi32>
    %c0_i32_11 = arith.constant 0 : i32
    %17 = vector.broadcast %c0_i32_11 : i32 to vector<32x128xi32>
    %18 = arith.cmpi slt, %14, %17 : vector<32x128xi32>
    %c0_i32_12 = arith.constant 0 : i32
    %19 = arith.cmpi slt, %12, %c0_i32_12 : i32
    %20 = vector.broadcast %19 : i1 to vector<32x128xi1>
    %21 = vector.broadcast %20 : vector<32x128xi1> to vector<32x128xi1>
    %22 = arith.xori %18, %21 : vector<32x128xi1>
    %23 = arith.andi %22, %16 : vector<32x128xi1>
    %24 = vector.broadcast %12 : i32 to vector<32x128xi32>
    %25 = arith.addi %14, %24 : vector<32x128xi32>
    %26 = arith.select %23, %25, %14 : vector<32x128xi1>, vector<32x128xi32>
    %c8_i32 = arith.constant 8 : i32
    %27 = vector.broadcast %c8_i32 : i32 to vector<32x128xi32>
    %28 = arith.cmpi slt, %9, %27 : vector<32x128xi32>
    %c120_i32 = arith.constant 120 : i32
    %29 = vector.broadcast %c120_i32 : i32 to vector<32x128xi32>
    %30 = arith.cmpi sge, %9, %29 : vector<32x128xi32>
    %c0_i32_13 = arith.constant 0 : i32
    %31 = vector.broadcast %c0_i32_13 : i32 to vector<32x128xi32>
    %32 = arith.cmpi eq, %26, %31 : vector<32x128xi32>
    %c15_i32 = arith.constant 15 : i32
    %33 = vector.broadcast %c15_i32 : i32 to vector<32x128xi32>
    %34 = arith.cmpi eq, %26, %33 : vector<32x128xi32>
    %cst = arith.constant 0.000000e+00 : f32
    %35 = vector.broadcast %cst : f32 to vector<32x128xf32>
    %36 = arith.maximumf %8, %35 : vector<32x128xf32>
    %37 = vector.extract_strided_slice %36 {offsets = [0, 0], sizes = [1, 128], strides = [1, 1]} : vector<32x128xf32> to vector<1x128xf32>
    %38 = vector.extract_strided_slice %36 {offsets = [0, 0], sizes = [31, 128], strides = [1, 1]} : vector<32x128xf32> to vector<31x128xf32>
    %39 = tpu.concatenate %37, %38 in 0 : vector<1x128xf32>, vector<31x128xf32> -> vector<32x128xf32>
    %40 = arith.select %32, %36, %39 : vector<32x128xi1>, vector<32x128xf32>
    %41 = vector.extract_strided_slice %36 {offsets = [1, 0], sizes = [31, 128], strides = [1, 1]} : vector<32x128xf32> to vector<31x128xf32>
    %42 = vector.extract_strided_slice %36 {offsets = [31, 0], sizes = [1, 128], strides = [1, 1]} : vector<32x128xf32> to vector<1x128xf32>
    %43 = tpu.concatenate %41, %42 in 0 : vector<31x128xf32>, vector<1x128xf32> -> vector<32x128xf32>
    %44 = arith.select %34, %36, %43 : vector<32x128xi1>, vector<32x128xf32>
    %c8_i32_14 = arith.constant 8 : i32
    %45 = tpu.dynamic_rotate %40 by %c8_i32_14 dim 1 : vector<32x128xf32>, i32 -> vector<32x128xf32>
    %46 = arith.select %28, %40, %45 : vector<32x128xi1>, vector<32x128xf32>
    %c120_i32_15 = arith.constant 120 : i32
    %47 = tpu.dynamic_rotate %40 by %c120_i32_15 dim 1 : vector<32x128xf32>, i32 -> vector<32x128xf32>
    %48 = arith.select %30, %40, %47 : vector<32x128xi1>, vector<32x128xf32>
    %49 = vector.extract_strided_slice %0 {offsets = [0, 0], sizes = [1, 128], strides = [1, 1]} : vector<9x128xf32> to vector<1x128xf32>
    %50 = vector.broadcast %49 : vector<1x128xf32> to vector<32x128xf32>
    %51 = arith.mulf %46, %50 : vector<32x128xf32>
    %52 = vector.extract_strided_slice %0 {offsets = [1, 0], sizes = [1, 128], strides = [1, 1]} : vector<9x128xf32> to vector<1x128xf32>
    %53 = vector.broadcast %52 : vector<1x128xf32> to vector<32x128xf32>
    %54 = arith.mulf %40, %53 : vector<32x128xf32>
    %55 = arith.addf %51, %54 : vector<32x128xf32>
    %56 = vector.extract_strided_slice %0 {offsets = [2, 0], sizes = [1, 128], strides = [1, 1]} : vector<9x128xf32> to vector<1x128xf32>
    %57 = vector.broadcast %56 : vector<1x128xf32> to vector<32x128xf32>
    %58 = arith.mulf %48, %57 : vector<32x128xf32>
    %59 = arith.addf %55, %58 : vector<32x128xf32>
    %c8_i32_16 = arith.constant 8 : i32
    %60 = tpu.dynamic_rotate %36 by %c8_i32_16 dim 1 : vector<32x128xf32>, i32 -> vector<32x128xf32>
    %61 = arith.select %28, %36, %60 : vector<32x128xi1>, vector<32x128xf32>
    %c120_i32_17 = arith.constant 120 : i32
    %62 = tpu.dynamic_rotate %36 by %c120_i32_17 dim 1 : vector<32x128xf32>, i32 -> vector<32x128xf32>
    %63 = arith.select %30, %36, %62 : vector<32x128xi1>, vector<32x128xf32>
    %64 = vector.extract_strided_slice %0 {offsets = [3, 0], sizes = [1, 128], strides = [1, 1]} : vector<9x128xf32> to vector<1x128xf32>
    %65 = vector.broadcast %64 : vector<1x128xf32> to vector<32x128xf32>
    %66 = arith.mulf %61, %65 : vector<32x128xf32>
    %67 = arith.addf %59, %66 : vector<32x128xf32>
    %68 = vector.extract_strided_slice %0 {offsets = [4, 0], sizes = [1, 128], strides = [1, 1]} : vector<9x128xf32> to vector<1x128xf32>
    %69 = vector.broadcast %68 : vector<1x128xf32> to vector<32x128xf32>
    %70 = arith.mulf %36, %69 : vector<32x128xf32>
    %71 = arith.addf %67, %70 : vector<32x128xf32>
    %72 = vector.extract_strided_slice %0 {offsets = [5, 0], sizes = [1, 128], strides = [1, 1]} : vector<9x128xf32> to vector<1x128xf32>
    %73 = vector.broadcast %72 : vector<1x128xf32> to vector<32x128xf32>
    %74 = arith.mulf %63, %73 : vector<32x128xf32>
    %75 = arith.addf %71, %74 : vector<32x128xf32>
    %c8_i32_18 = arith.constant 8 : i32
    %76 = tpu.dynamic_rotate %44 by %c8_i32_18 dim 1 : vector<32x128xf32>, i32 -> vector<32x128xf32>
    %77 = arith.select %28, %44, %76 : vector<32x128xi1>, vector<32x128xf32>
    %c120_i32_19 = arith.constant 120 : i32
    %78 = tpu.dynamic_rotate %44 by %c120_i32_19 dim 1 : vector<32x128xf32>, i32 -> vector<32x128xf32>
    %79 = arith.select %30, %44, %78 : vector<32x128xi1>, vector<32x128xf32>
    %80 = vector.extract_strided_slice %0 {offsets = [6, 0], sizes = [1, 128], strides = [1, 1]} : vector<9x128xf32> to vector<1x128xf32>
    %81 = vector.broadcast %80 : vector<1x128xf32> to vector<32x128xf32>
    %82 = arith.mulf %77, %81 : vector<32x128xf32>
    %83 = arith.addf %75, %82 : vector<32x128xf32>
    %84 = vector.extract_strided_slice %0 {offsets = [7, 0], sizes = [1, 128], strides = [1, 1]} : vector<9x128xf32> to vector<1x128xf32>
    %85 = vector.broadcast %84 : vector<1x128xf32> to vector<32x128xf32>
    %86 = arith.mulf %44, %85 : vector<32x128xf32>
    %87 = arith.addf %83, %86 : vector<32x128xf32>
    %88 = vector.extract_strided_slice %0 {offsets = [8, 0], sizes = [1, 128], strides = [1, 1]} : vector<9x128xf32> to vector<1x128xf32>
    %89 = vector.broadcast %88 : vector<1x128xf32> to vector<32x128xf32>
    %90 = arith.mulf %79, %89 : vector<32x128xf32>
    %91 = arith.addf %87, %90 : vector<32x128xf32>
    %92 = vector.extract_strided_slice %1 {offsets = [0, 0], sizes = [1, 128], strides = [1, 1]} : vector<11x128xf32> to vector<1x128xf32>
    %c125_i32 = arith.constant 125 : i32
    %93 = tpu.dynamic_rotate %91 by %c125_i32 dim 1 : vector<32x128xf32>, i32 -> vector<32x128xf32>
    %94 = vector.broadcast %92 : vector<1x128xf32> to vector<32x128xf32>
    %95 = arith.mulf %94, %93 : vector<32x128xf32>
    %96 = vector.extract_strided_slice %1 {offsets = [1, 0], sizes = [1, 128], strides = [1, 1]} : vector<11x128xf32> to vector<1x128xf32>
    %c126_i32 = arith.constant 126 : i32
    %97 = tpu.dynamic_rotate %91 by %c126_i32 dim 1 : vector<32x128xf32>, i32 -> vector<32x128xf32>
    %98 = vector.broadcast %96 : vector<1x128xf32> to vector<32x128xf32>
    %99 = arith.mulf %98, %97 : vector<32x128xf32>
    %100 = arith.addf %95, %99 : vector<32x128xf32>
    %101 = vector.extract_strided_slice %1 {offsets = [2, 0], sizes = [1, 128], strides = [1, 1]} : vector<11x128xf32> to vector<1x128xf32>
    %c127_i32 = arith.constant 127 : i32
    %102 = tpu.dynamic_rotate %91 by %c127_i32 dim 1 : vector<32x128xf32>, i32 -> vector<32x128xf32>
    %103 = vector.broadcast %101 : vector<1x128xf32> to vector<32x128xf32>
    %104 = arith.mulf %103, %102 : vector<32x128xf32>
    %105 = arith.addf %100, %104 : vector<32x128xf32>
    %106 = vector.extract_strided_slice %1 {offsets = [3, 0], sizes = [1, 128], strides = [1, 1]} : vector<11x128xf32> to vector<1x128xf32>
    %107 = vector.broadcast %106 : vector<1x128xf32> to vector<32x128xf32>
    %108 = arith.mulf %107, %91 : vector<32x128xf32>
    %109 = arith.addf %105, %108 : vector<32x128xf32>
    %110 = vector.extract_strided_slice %1 {offsets = [4, 0], sizes = [1, 128], strides = [1, 1]} : vector<11x128xf32> to vector<1x128xf32>
    %c1_i32_20 = arith.constant 1 : i32
    %111 = tpu.dynamic_rotate %91 by %c1_i32_20 dim 1 : vector<32x128xf32>, i32 -> vector<32x128xf32>
    %112 = vector.broadcast %110 : vector<1x128xf32> to vector<32x128xf32>
    %113 = arith.mulf %112, %111 : vector<32x128xf32>
    %114 = arith.addf %109, %113 : vector<32x128xf32>
    %115 = vector.extract_strided_slice %1 {offsets = [5, 0], sizes = [1, 128], strides = [1, 1]} : vector<11x128xf32> to vector<1x128xf32>
    %c2_i32 = arith.constant 2 : i32
    %116 = tpu.dynamic_rotate %91 by %c2_i32 dim 1 : vector<32x128xf32>, i32 -> vector<32x128xf32>
    %117 = vector.broadcast %115 : vector<1x128xf32> to vector<32x128xf32>
    %118 = arith.mulf %117, %116 : vector<32x128xf32>
    %119 = arith.addf %114, %118 : vector<32x128xf32>
    %120 = vector.extract_strided_slice %1 {offsets = [6, 0], sizes = [1, 128], strides = [1, 1]} : vector<11x128xf32> to vector<1x128xf32>
    %c3_i32 = arith.constant 3 : i32
    %121 = tpu.dynamic_rotate %91 by %c3_i32 dim 1 : vector<32x128xf32>, i32 -> vector<32x128xf32>
    %122 = vector.broadcast %120 : vector<1x128xf32> to vector<32x128xf32>
    %123 = arith.mulf %122, %121 : vector<32x128xf32>
    %124 = arith.addf %119, %123 : vector<32x128xf32>
    %125 = vector.extract_strided_slice %1 {offsets = [7, 0], sizes = [1, 128], strides = [1, 1]} : vector<11x128xf32> to vector<1x128xf32>
    %c4_i32 = arith.constant 4 : i32
    %126 = tpu.dynamic_rotate %91 by %c4_i32 dim 1 : vector<32x128xf32>, i32 -> vector<32x128xf32>
    %127 = vector.broadcast %125 : vector<1x128xf32> to vector<32x128xf32>
    %128 = arith.mulf %127, %126 : vector<32x128xf32>
    %129 = arith.addf %124, %128 : vector<32x128xf32>
    %130 = vector.extract_strided_slice %1 {offsets = [8, 0], sizes = [1, 128], strides = [1, 1]} : vector<11x128xf32> to vector<1x128xf32>
    %c5_i32 = arith.constant 5 : i32
    %131 = tpu.dynamic_rotate %91 by %c5_i32 dim 1 : vector<32x128xf32>, i32 -> vector<32x128xf32>
    %132 = vector.broadcast %130 : vector<1x128xf32> to vector<32x128xf32>
    %133 = arith.mulf %132, %131 : vector<32x128xf32>
    %134 = arith.addf %129, %133 : vector<32x128xf32>
    %135 = vector.extract_strided_slice %1 {offsets = [9, 0], sizes = [1, 128], strides = [1, 1]} : vector<11x128xf32> to vector<1x128xf32>
    %c6_i32 = arith.constant 6 : i32
    %136 = tpu.dynamic_rotate %91 by %c6_i32 dim 1 : vector<32x128xf32>, i32 -> vector<32x128xf32>
    %137 = vector.broadcast %135 : vector<1x128xf32> to vector<32x128xf32>
    %138 = arith.mulf %137, %136 : vector<32x128xf32>
    %139 = arith.addf %134, %138 : vector<32x128xf32>
    %140 = vector.extract_strided_slice %1 {offsets = [10, 0], sizes = [1, 128], strides = [1, 1]} : vector<11x128xf32> to vector<1x128xf32>
    %c7_i32 = arith.constant 7 : i32
    %141 = tpu.dynamic_rotate %91 by %c7_i32 dim 1 : vector<32x128xf32>, i32 -> vector<32x128xf32>
    %142 = vector.broadcast %140 : vector<1x128xf32> to vector<32x128xf32>
    %143 = arith.mulf %142, %141 : vector<32x128xf32>
    %144 = arith.addf %139, %143 : vector<32x128xf32>
    %145 = vector.broadcast %2 : vector<1x128xf32> to vector<32x128xf32>
    %146 = arith.addf %144, %145 : vector<32x128xf32>
    %cst_21 = arith.constant 0.000000e+00 : f32
    %147 = vector.broadcast %cst_21 : f32 to vector<32x128xf32>
    %148 = arith.maximumf %146, %147 : vector<32x128xf32>
    %149 = vector.extract_strided_slice %148 {offsets = [0, 0], sizes = [1, 128], strides = [1, 1]} : vector<32x128xf32> to vector<1x128xf32>
    %150 = vector.extract_strided_slice %148 {offsets = [0, 0], sizes = [31, 128], strides = [1, 1]} : vector<32x128xf32> to vector<31x128xf32>
    %151 = tpu.concatenate %149, %150 in 0 : vector<1x128xf32>, vector<31x128xf32> -> vector<32x128xf32>
    %152 = arith.select %32, %148, %151 : vector<32x128xi1>, vector<32x128xf32>
    %153 = vector.extract_strided_slice %148 {offsets = [1, 0], sizes = [31, 128], strides = [1, 1]} : vector<32x128xf32> to vector<31x128xf32>
    %154 = vector.extract_strided_slice %148 {offsets = [31, 0], sizes = [1, 128], strides = [1, 1]} : vector<32x128xf32> to vector<1x128xf32>
    %155 = tpu.concatenate %153, %154 in 0 : vector<31x128xf32>, vector<1x128xf32> -> vector<32x128xf32>
    %156 = arith.select %34, %148, %155 : vector<32x128xi1>, vector<32x128xf32>
    %c8_i32_22 = arith.constant 8 : i32
    %157 = tpu.dynamic_rotate %152 by %c8_i32_22 dim 1 : vector<32x128xf32>, i32 -> vector<32x128xf32>
    %158 = arith.select %28, %152, %157 : vector<32x128xi1>, vector<32x128xf32>
    %c120_i32_23 = arith.constant 120 : i32
    %159 = tpu.dynamic_rotate %152 by %c120_i32_23 dim 1 : vector<32x128xf32>, i32 -> vector<32x128xf32>
    %160 = arith.select %30, %152, %159 : vector<32x128xi1>, vector<32x128xf32>
    %161 = vector.extract_strided_slice %3 {offsets = [0, 0], sizes = [1, 128], strides = [1, 1]} : vector<9x128xf32> to vector<1x128xf32>
    %162 = vector.broadcast %161 : vector<1x128xf32> to vector<32x128xf32>
    %163 = arith.mulf %158, %162 : vector<32x128xf32>
    %164 = vector.extract_strided_slice %3 {offsets = [1, 0], sizes = [1, 128], strides = [1, 1]} : vector<9x128xf32> to vector<1x128xf32>
    %165 = vector.broadcast %164 : vector<1x128xf32> to vector<32x128xf32>
    %166 = arith.mulf %152, %165 : vector<32x128xf32>
    %167 = arith.addf %163, %166 : vector<32x128xf32>
    %168 = vector.extract_strided_slice %3 {offsets = [2, 0], sizes = [1, 128], strides = [1, 1]} : vector<9x128xf32> to vector<1x128xf32>
    %169 = vector.broadcast %168 : vector<1x128xf32> to vector<32x128xf32>
    %170 = arith.mulf %160, %169 : vector<32x128xf32>
    %171 = arith.addf %167, %170 : vector<32x128xf32>
    %c8_i32_24 = arith.constant 8 : i32
    %172 = tpu.dynamic_rotate %148 by %c8_i32_24 dim 1 : vector<32x128xf32>, i32 -> vector<32x128xf32>
    %173 = arith.select %28, %148, %172 : vector<32x128xi1>, vector<32x128xf32>
    %c120_i32_25 = arith.constant 120 : i32
    %174 = tpu.dynamic_rotate %148 by %c120_i32_25 dim 1 : vector<32x128xf32>, i32 -> vector<32x128xf32>
    %175 = arith.select %30, %148, %174 : vector<32x128xi1>, vector<32x128xf32>
    %176 = vector.extract_strided_slice %3 {offsets = [3, 0], sizes = [1, 128], strides = [1, 1]} : vector<9x128xf32> to vector<1x128xf32>
    %177 = vector.broadcast %176 : vector<1x128xf32> to vector<32x128xf32>
    %178 = arith.mulf %173, %177 : vector<32x128xf32>
    %179 = arith.addf %171, %178 : vector<32x128xf32>
    %180 = vector.extract_strided_slice %3 {offsets = [4, 0], sizes = [1, 128], strides = [1, 1]} : vector<9x128xf32> to vector<1x128xf32>
    %181 = vector.broadcast %180 : vector<1x128xf32> to vector<32x128xf32>
    %182 = arith.mulf %148, %181 : vector<32x128xf32>
    %183 = arith.addf %179, %182 : vector<32x128xf32>
    %184 = vector.extract_strided_slice %3 {offsets = [5, 0], sizes = [1, 128], strides = [1, 1]} : vector<9x128xf32> to vector<1x128xf32>
    %185 = vector.broadcast %184 : vector<1x128xf32> to vector<32x128xf32>
    %186 = arith.mulf %175, %185 : vector<32x128xf32>
    %187 = arith.addf %183, %186 : vector<32x128xf32>
    %c8_i32_26 = arith.constant 8 : i32
    %188 = tpu.dynamic_rotate %156 by %c8_i32_26 dim 1 : vector<32x128xf32>, i32 -> vector<32x128xf32>
    %189 = arith.select %28, %156, %188 : vector<32x128xi1>, vector<32x128xf32>
    %c120_i32_27 = arith.constant 120 : i32
    %190 = tpu.dynamic_rotate %156 by %c120_i32_27 dim 1 : vector<32x128xf32>, i32 -> vector<32x128xf32>
    %191 = arith.select %30, %156, %190 : vector<32x128xi1>, vector<32x128xf32>
    %192 = vector.extract_strided_slice %3 {offsets = [6, 0], sizes = [1, 128], strides = [1, 1]} : vector<9x128xf32> to vector<1x128xf32>
    %193 = vector.broadcast %192 : vector<1x128xf32> to vector<32x128xf32>
    %194 = arith.mulf %189, %193 : vector<32x128xf32>
    %195 = arith.addf %187, %194 : vector<32x128xf32>
    %196 = vector.extract_strided_slice %3 {offsets = [7, 0], sizes = [1, 128], strides = [1, 1]} : vector<9x128xf32> to vector<1x128xf32>
    %197 = vector.broadcast %196 : vector<1x128xf32> to vector<32x128xf32>
    %198 = arith.mulf %156, %197 : vector<32x128xf32>
    %199 = arith.addf %195, %198 : vector<32x128xf32>
    %200 = vector.extract_strided_slice %3 {offsets = [8, 0], sizes = [1, 128], strides = [1, 1]} : vector<9x128xf32> to vector<1x128xf32>
    %201 = vector.broadcast %200 : vector<1x128xf32> to vector<32x128xf32>
    %202 = arith.mulf %191, %201 : vector<32x128xf32>
    %203 = arith.addf %199, %202 : vector<32x128xf32>
    %204 = vector.extract_strided_slice %4 {offsets = [0, 0], sizes = [1, 128], strides = [1, 1]} : vector<15x128xf32> to vector<1x128xf32>
    %c121_i32 = arith.constant 121 : i32
    %205 = tpu.dynamic_rotate %203 by %c121_i32 dim 1 : vector<32x128xf32>, i32 -> vector<32x128xf32>
    %206 = vector.broadcast %204 : vector<1x128xf32> to vector<32x128xf32>
    %207 = arith.mulf %206, %205 : vector<32x128xf32>
    %208 = vector.extract_strided_slice %4 {offsets = [1, 0], sizes = [1, 128], strides = [1, 1]} : vector<15x128xf32> to vector<1x128xf32>
    %c122_i32 = arith.constant 122 : i32
    %209 = tpu.dynamic_rotate %203 by %c122_i32 dim 1 : vector<32x128xf32>, i32 -> vector<32x128xf32>
    %210 = vector.broadcast %208 : vector<1x128xf32> to vector<32x128xf32>
    %211 = arith.mulf %210, %209 : vector<32x128xf32>
    %212 = arith.addf %207, %211 : vector<32x128xf32>
    %213 = vector.extract_strided_slice %4 {offsets = [2, 0], sizes = [1, 128], strides = [1, 1]} : vector<15x128xf32> to vector<1x128xf32>
    %c123_i32 = arith.constant 123 : i32
    %214 = tpu.dynamic_rotate %203 by %c123_i32 dim 1 : vector<32x128xf32>, i32 -> vector<32x128xf32>
    %215 = vector.broadcast %213 : vector<1x128xf32> to vector<32x128xf32>
    %216 = arith.mulf %215, %214 : vector<32x128xf32>
    %217 = arith.addf %212, %216 : vector<32x128xf32>
    %218 = vector.extract_strided_slice %4 {offsets = [3, 0], sizes = [1, 128], strides = [1, 1]} : vector<15x128xf32> to vector<1x128xf32>
    %c124_i32 = arith.constant 124 : i32
    %219 = tpu.dynamic_rotate %203 by %c124_i32 dim 1 : vector<32x128xf32>, i32 -> vector<32x128xf32>
    %220 = vector.broadcast %218 : vector<1x128xf32> to vector<32x128xf32>
    %221 = arith.mulf %220, %219 : vector<32x128xf32>
    %222 = arith.addf %217, %221 : vector<32x128xf32>
    %223 = vector.extract_strided_slice %4 {offsets = [4, 0], sizes = [1, 128], strides = [1, 1]} : vector<15x128xf32> to vector<1x128xf32>
    %c125_i32_28 = arith.constant 125 : i32
    %224 = tpu.dynamic_rotate %203 by %c125_i32_28 dim 1 : vector<32x128xf32>, i32 -> vector<32x128xf32>
    %225 = vector.broadcast %223 : vector<1x128xf32> to vector<32x128xf32>
    %226 = arith.mulf %225, %224 : vector<32x128xf32>
    %227 = arith.addf %222, %226 : vector<32x128xf32>
    %228 = vector.extract_strided_slice %4 {offsets = [5, 0], sizes = [1, 128], strides = [1, 1]} : vector<15x128xf32> to vector<1x128xf32>
    %c126_i32_29 = arith.constant 126 : i32
    %229 = tpu.dynamic_rotate %203 by %c126_i32_29 dim 1 : vector<32x128xf32>, i32 -> vector<32x128xf32>
    %230 = vector.broadcast %228 : vector<1x128xf32> to vector<32x128xf32>
    %231 = arith.mulf %230, %229 : vector<32x128xf32>
    %232 = arith.addf %227, %231 : vector<32x128xf32>
    %233 = vector.extract_strided_slice %4 {offsets = [6, 0], sizes = [1, 128], strides = [1, 1]} : vector<15x128xf32> to vector<1x128xf32>
    %c127_i32_30 = arith.constant 127 : i32
    %234 = tpu.dynamic_rotate %203 by %c127_i32_30 dim 1 : vector<32x128xf32>, i32 -> vector<32x128xf32>
    %235 = vector.broadcast %233 : vector<1x128xf32> to vector<32x128xf32>
    %236 = arith.mulf %235, %234 : vector<32x128xf32>
    %237 = arith.addf %232, %236 : vector<32x128xf32>
    %238 = vector.extract_strided_slice %4 {offsets = [7, 0], sizes = [1, 128], strides = [1, 1]} : vector<15x128xf32> to vector<1x128xf32>
    %239 = vector.broadcast %238 : vector<1x128xf32> to vector<32x128xf32>
    %240 = arith.mulf %239, %203 : vector<32x128xf32>
    %241 = arith.addf %237, %240 : vector<32x128xf32>
    %242 = vector.extract_strided_slice %4 {offsets = [8, 0], sizes = [1, 128], strides = [1, 1]} : vector<15x128xf32> to vector<1x128xf32>
    %c1_i32_31 = arith.constant 1 : i32
    %243 = tpu.dynamic_rotate %203 by %c1_i32_31 dim 1 : vector<32x128xf32>, i32 -> vector<32x128xf32>
    %244 = vector.broadcast %242 : vector<1x128xf32> to vector<32x128xf32>
    %245 = arith.mulf %244, %243 : vector<32x128xf32>
    %246 = arith.addf %241, %245 : vector<32x128xf32>
    %247 = vector.extract_strided_slice %4 {offsets = [9, 0], sizes = [1, 128], strides = [1, 1]} : vector<15x128xf32> to vector<1x128xf32>
    %c2_i32_32 = arith.constant 2 : i32
    %248 = tpu.dynamic_rotate %203 by %c2_i32_32 dim 1 : vector<32x128xf32>, i32 -> vector<32x128xf32>
    %249 = vector.broadcast %247 : vector<1x128xf32> to vector<32x128xf32>
    %250 = arith.mulf %249, %248 : vector<32x128xf32>
    %251 = arith.addf %246, %250 : vector<32x128xf32>
    %252 = vector.extract_strided_slice %4 {offsets = [10, 0], sizes = [1, 128], strides = [1, 1]} : vector<15x128xf32> to vector<1x128xf32>
    %c3_i32_33 = arith.constant 3 : i32
    %253 = tpu.dynamic_rotate %203 by %c3_i32_33 dim 1 : vector<32x128xf32>, i32 -> vector<32x128xf32>
    %254 = vector.broadcast %252 : vector<1x128xf32> to vector<32x128xf32>
    %255 = arith.mulf %254, %253 : vector<32x128xf32>
    %256 = arith.addf %251, %255 : vector<32x128xf32>
    %257 = vector.extract_strided_slice %4 {offsets = [11, 0], sizes = [1, 128], strides = [1, 1]} : vector<15x128xf32> to vector<1x128xf32>
    %c4_i32_34 = arith.constant 4 : i32
    %258 = tpu.dynamic_rotate %203 by %c4_i32_34 dim 1 : vector<32x128xf32>, i32 -> vector<32x128xf32>
    %259 = vector.broadcast %257 : vector<1x128xf32> to vector<32x128xf32>
    %260 = arith.mulf %259, %258 : vector<32x128xf32>
    %261 = arith.addf %256, %260 : vector<32x128xf32>
    %262 = vector.extract_strided_slice %4 {offsets = [12, 0], sizes = [1, 128], strides = [1, 1]} : vector<15x128xf32> to vector<1x128xf32>
    %c5_i32_35 = arith.constant 5 : i32
    %263 = tpu.dynamic_rotate %203 by %c5_i32_35 dim 1 : vector<32x128xf32>, i32 -> vector<32x128xf32>
    %264 = vector.broadcast %262 : vector<1x128xf32> to vector<32x128xf32>
    %265 = arith.mulf %264, %263 : vector<32x128xf32>
    %266 = arith.addf %261, %265 : vector<32x128xf32>
    %267 = vector.extract_strided_slice %4 {offsets = [13, 0], sizes = [1, 128], strides = [1, 1]} : vector<15x128xf32> to vector<1x128xf32>
    %c6_i32_36 = arith.constant 6 : i32
    %268 = tpu.dynamic_rotate %203 by %c6_i32_36 dim 1 : vector<32x128xf32>, i32 -> vector<32x128xf32>
    %269 = vector.broadcast %267 : vector<1x128xf32> to vector<32x128xf32>
    %270 = arith.mulf %269, %268 : vector<32x128xf32>
    %271 = arith.addf %266, %270 : vector<32x128xf32>
    %272 = vector.extract_strided_slice %4 {offsets = [14, 0], sizes = [1, 128], strides = [1, 1]} : vector<15x128xf32> to vector<1x128xf32>
    %c7_i32_37 = arith.constant 7 : i32
    %273 = tpu.dynamic_rotate %203 by %c7_i32_37 dim 1 : vector<32x128xf32>, i32 -> vector<32x128xf32>
    %274 = vector.broadcast %272 : vector<1x128xf32> to vector<32x128xf32>
    %275 = arith.mulf %274, %273 : vector<32x128xf32>
    %276 = arith.addf %271, %275 : vector<32x128xf32>
    %277 = vector.broadcast %5 : vector<1x128xf32> to vector<32x128xf32>
    %278 = arith.addf %276, %277 : vector<32x128xf32>
    %c8_i32_38 = arith.constant 8 : i32
    %279 = tpu.dynamic_rotate %278 by %c8_i32_38 dim 1 : vector<32x128xf32>, i32 -> vector<32x128xf32>
    %280 = arith.select %28, %278, %279 : vector<32x128xi1>, vector<32x128xf32>
    %c120_i32_39 = arith.constant 120 : i32
    %281 = tpu.dynamic_rotate %278 by %c120_i32_39 dim 1 : vector<32x128xf32>, i32 -> vector<32x128xf32>
    %282 = arith.select %30, %278, %281 : vector<32x128xi1>, vector<32x128xf32>
    %283 = arith.maximumf %280, %278 : vector<32x128xf32>
    %284 = arith.maximumf %283, %282 : vector<32x128xf32>
    %285 = vector.extract_strided_slice %284 {offsets = [0, 0], sizes = [1, 128], strides = [1, 1]} : vector<32x128xf32> to vector<1x128xf32>
    %286 = vector.extract_strided_slice %284 {offsets = [0, 0], sizes = [31, 128], strides = [1, 1]} : vector<32x128xf32> to vector<31x128xf32>
    %287 = tpu.concatenate %285, %286 in 0 : vector<1x128xf32>, vector<31x128xf32> -> vector<32x128xf32>
    %288 = arith.select %32, %284, %287 : vector<32x128xi1>, vector<32x128xf32>
    %289 = arith.maximumf %288, %284 : vector<32x128xf32>
    %290 = vector.extract_strided_slice %284 {offsets = [1, 0], sizes = [31, 128], strides = [1, 1]} : vector<32x128xf32> to vector<31x128xf32>
    %291 = vector.extract_strided_slice %284 {offsets = [31, 0], sizes = [1, 128], strides = [1, 1]} : vector<32x128xf32> to vector<1x128xf32>
    %292 = tpu.concatenate %290, %291 in 0 : vector<31x128xf32>, vector<1x128xf32> -> vector<32x128xf32>
    %293 = arith.select %34, %284, %292 : vector<32x128xi1>, vector<32x128xf32>
    %294 = arith.maximumf %289, %293 : vector<32x128xf32>
    %295 = vector.extract_strided_slice %6 {offsets = [0, 0], sizes = [1, 128], strides = [1, 1]} : vector<11x128xf32> to vector<1x128xf32>
    %c125_i32_40 = arith.constant 125 : i32
    %296 = tpu.dynamic_rotate %8 by %c125_i32_40 dim 1 : vector<32x128xf32>, i32 -> vector<32x128xf32>
    %297 = vector.broadcast %295 : vector<1x128xf32> to vector<32x128xf32>
    %298 = arith.mulf %297, %296 : vector<32x128xf32>
    %299 = vector.extract_strided_slice %6 {offsets = [1, 0], sizes = [1, 128], strides = [1, 1]} : vector<11x128xf32> to vector<1x128xf32>
    %c126_i32_41 = arith.constant 126 : i32
    %300 = tpu.dynamic_rotate %8 by %c126_i32_41 dim 1 : vector<32x128xf32>, i32 -> vector<32x128xf32>
    %301 = vector.broadcast %299 : vector<1x128xf32> to vector<32x128xf32>
    %302 = arith.mulf %301, %300 : vector<32x128xf32>
    %303 = arith.addf %298, %302 : vector<32x128xf32>
    %304 = vector.extract_strided_slice %6 {offsets = [2, 0], sizes = [1, 128], strides = [1, 1]} : vector<11x128xf32> to vector<1x128xf32>
    %c127_i32_42 = arith.constant 127 : i32
    %305 = tpu.dynamic_rotate %8 by %c127_i32_42 dim 1 : vector<32x128xf32>, i32 -> vector<32x128xf32>
    %306 = vector.broadcast %304 : vector<1x128xf32> to vector<32x128xf32>
    %307 = arith.mulf %306, %305 : vector<32x128xf32>
    %308 = arith.addf %303, %307 : vector<32x128xf32>
    %309 = vector.extract_strided_slice %6 {offsets = [3, 0], sizes = [1, 128], strides = [1, 1]} : vector<11x128xf32> to vector<1x128xf32>
    %310 = vector.broadcast %309 : vector<1x128xf32> to vector<32x128xf32>
    %311 = arith.mulf %310, %8 : vector<32x128xf32>
    %312 = arith.addf %308, %311 : vector<32x128xf32>
    %313 = vector.extract_strided_slice %6 {offsets = [4, 0], sizes = [1, 128], strides = [1, 1]} : vector<11x128xf32> to vector<1x128xf32>
    %c1_i32_43 = arith.constant 1 : i32
    %314 = tpu.dynamic_rotate %8 by %c1_i32_43 dim 1 : vector<32x128xf32>, i32 -> vector<32x128xf32>
    %315 = vector.broadcast %313 : vector<1x128xf32> to vector<32x128xf32>
    %316 = arith.mulf %315, %314 : vector<32x128xf32>
    %317 = arith.addf %312, %316 : vector<32x128xf32>
    %318 = vector.extract_strided_slice %6 {offsets = [5, 0], sizes = [1, 128], strides = [1, 1]} : vector<11x128xf32> to vector<1x128xf32>
    %c2_i32_44 = arith.constant 2 : i32
    %319 = tpu.dynamic_rotate %8 by %c2_i32_44 dim 1 : vector<32x128xf32>, i32 -> vector<32x128xf32>
    %320 = vector.broadcast %318 : vector<1x128xf32> to vector<32x128xf32>
    %321 = arith.mulf %320, %319 : vector<32x128xf32>
    %322 = arith.addf %317, %321 : vector<32x128xf32>
    %323 = vector.extract_strided_slice %6 {offsets = [6, 0], sizes = [1, 128], strides = [1, 1]} : vector<11x128xf32> to vector<1x128xf32>
    %c3_i32_45 = arith.constant 3 : i32
    %324 = tpu.dynamic_rotate %8 by %c3_i32_45 dim 1 : vector<32x128xf32>, i32 -> vector<32x128xf32>
    %325 = vector.broadcast %323 : vector<1x128xf32> to vector<32x128xf32>
    %326 = arith.mulf %325, %324 : vector<32x128xf32>
    %327 = arith.addf %322, %326 : vector<32x128xf32>
    %328 = vector.extract_strided_slice %6 {offsets = [7, 0], sizes = [1, 128], strides = [1, 1]} : vector<11x128xf32> to vector<1x128xf32>
    %c4_i32_46 = arith.constant 4 : i32
    %329 = tpu.dynamic_rotate %8 by %c4_i32_46 dim 1 : vector<32x128xf32>, i32 -> vector<32x128xf32>
    %330 = vector.broadcast %328 : vector<1x128xf32> to vector<32x128xf32>
    %331 = arith.mulf %330, %329 : vector<32x128xf32>
    %332 = arith.addf %327, %331 : vector<32x128xf32>
    %333 = vector.extract_strided_slice %6 {offsets = [8, 0], sizes = [1, 128], strides = [1, 1]} : vector<11x128xf32> to vector<1x128xf32>
    %c5_i32_47 = arith.constant 5 : i32
    %334 = tpu.dynamic_rotate %8 by %c5_i32_47 dim 1 : vector<32x128xf32>, i32 -> vector<32x128xf32>
    %335 = vector.broadcast %333 : vector<1x128xf32> to vector<32x128xf32>
    %336 = arith.mulf %335, %334 : vector<32x128xf32>
    %337 = arith.addf %332, %336 : vector<32x128xf32>
    %338 = vector.extract_strided_slice %6 {offsets = [9, 0], sizes = [1, 128], strides = [1, 1]} : vector<11x128xf32> to vector<1x128xf32>
    %c6_i32_48 = arith.constant 6 : i32
    %339 = tpu.dynamic_rotate %8 by %c6_i32_48 dim 1 : vector<32x128xf32>, i32 -> vector<32x128xf32>
    %340 = vector.broadcast %338 : vector<1x128xf32> to vector<32x128xf32>
    %341 = arith.mulf %340, %339 : vector<32x128xf32>
    %342 = arith.addf %337, %341 : vector<32x128xf32>
    %343 = vector.extract_strided_slice %6 {offsets = [10, 0], sizes = [1, 128], strides = [1, 1]} : vector<11x128xf32> to vector<1x128xf32>
    %c7_i32_49 = arith.constant 7 : i32
    %344 = tpu.dynamic_rotate %8 by %c7_i32_49 dim 1 : vector<32x128xf32>, i32 -> vector<32x128xf32>
    %345 = vector.broadcast %343 : vector<1x128xf32> to vector<32x128xf32>
    %346 = arith.mulf %345, %344 : vector<32x128xf32>
    %347 = arith.addf %342, %346 : vector<32x128xf32>
    %348 = vector.broadcast %7 : vector<1x128xf32> to vector<32x128xf32>
    %349 = arith.addf %347, %348 : vector<32x128xf32>
    %350 = arith.addf %294, %349 : vector<32x128xf32>
    %c0_50 = arith.constant 0 : index
    %c0_51 = arith.constant 0 : index
    %351 = vector.load %arg3[%c0_50, %c0_51] : memref<32x128xf32, #tpu.memory_space<vmem>>, vector<32x128xf32>
    tpu.vector_store %arg3[%c0_50, %c0_51], %350 {strides = array<i32>} : memref<32x128xf32, #tpu.memory_space<vmem>>, vector<32x128xf32>,
    return
  }
  func.func @transform_0(%arg0: i32) -> (i32, i32) {
    %c0_i32 = arith.constant 0 : i32
    %c0_i32_0 = arith.constant 0 : i32
    %c0_i32_1 = arith.constant 0 : i32
    return %c0_i32, %c0_i32_0 : i32, i32
  }
  func.func @transform_1(%arg0: i32) -> (i32, i32) {
    %c0_i32 = arith.constant 0 : i32
    %c0_i32_0 = arith.constant 0 : i32
    %c0_i32_1 = arith.constant 0 : i32
    return %c0_i32, %c0_i32_0 : i32, i32
  }
  func.func @transform_2(%arg0: i32) -> (i32, i32) {
    %c0_i32 = arith.constant 0 : i32
    %c0_i32_0 = arith.constant 0 : i32
    %c0_i32_1 = arith.constant 0 : i32
    return %c0_i32, %c0_i32_0 : i32, i32
  }
}

</mosaic_0001>

<bundles_post_ra>
// kernel: tile.214
= control target key start
LH: loop header
LB: loop body
LE: loop exit
PB: predicated region body
PF: predicated region fallthrough
CT: control target
= control target key end

     0   :  { %vm6_vm0 = vcmask 1043458   ;;  %s53_s10 = smov 3  ;;  %s56_s11 = smov 12  ;;  %vm10_vm1 = vcmask 1045508   ;;  %vm14_vm2 = vcmask 1047558   ;;  %vm16_vm3 = vcmask 64512   ;;  %s978_s0 = inlined_call_operand.vmem [shape: f32[9,16,8], index: 0, kind: input, shape index: {}]   ;;  %s979_s1 = inlined_call_operand.vmem [shape: f32[9,128], index: 1, kind: output, shape index: {}]  }
   0x1   :  { %v470_v0 = vld [vmem:[%s978_s0 + $0x8e] sm:$0x1]   ;;  %v464_v1 = vld [vmem:[%s978_s0 + $0x8f] sm:$0x1]   ;;  %s565_s12 = smov 112   ;;  %s566_s13 = smov 120  }
   0x2   :  { %76 = vrot.lane.b32.xlu1 %v470_v0, %s565_s12  ;;  %47 = vrot.lane.b32.xlu0 %v464_v1, %s566_s13  ;;  %v466_v2 = vld [vmem:[%s978_s0 + $0xe] ss:$16 sm:%s53_s10]   ;;  %s61_s16 = smov 48  ;;  %s66_s17 = smov 192  ;;  %vm43_vm4 = vcmask 1048512   ;;  %vm72_vm5 = vcmask 982912  }
   0x3   :  { %v467_v3 = vld [vmem:[%s978_s0 + $0xe] ss:$16 sm:%s56_s11]   ;;  %s24_s22 = smov 3  ;;  %s27_s23 = smov 12  ;;  %v476_v15 = vld [vmem:[%s978_s0 + $0x8d] sm:$0x1]  }
   0x4   :  { %v468_v4 = vld [vmem:[%s978_s0 + $0xe] ss:$16 sm:%s61_s16]   ;;  %v59_v5 = vsel %vm6_vm0, %v467_v3, %v466_v2  ;;  %v460_v7 = vld [vmem:[%s978_s0 + $0xf] ss:$16 sm:%s24_s22]   ;;  %s32_s28 = smov 48  ;;  %s37_s29 = smov 192 }
   0x5   :  { %v469_v6 = vld [vmem:[%s978_s0 + $0xe] ss:$16 sm:%s66_s17]   ;;  %v64_v8 = vsel %vm10_vm1, %v468_v4, %v59_v5  ;;  %v461_v9 = vld [vmem:[%s978_s0 + $0xf] ss:$16 sm:%s27_s23]   ;;  %s82_s5 = smov 3  ;;  %s85_s8 = smov 12 }
   0x6   :  { %v462_v10 = vld [vmem:[%s978_s0 + $0xf] ss:$16 sm:%s32_s28]   ;;  %v69_v11 = vsel %vm14_vm2, %v469_v6, %v64_v8  ;;  %v30_v12 = vsel %vm6_vm0, %v461_v9, %v460_v7  ;;  %s90_s9 = smov 48  ;;  %v472_v16 = vld [vmem:[%s978_s0 + $0xd] ss:$16 sm:%s82_s5]   ;;  %s95_s15 = smov 192 }
   0x7   :  { %v463_v13 = vld [vmem:[%s978_s0 + $0xf] ss:$16 sm:%s37_s29]   ;;  %70 = vrot.lane.b32.xlu1 %v69_v11, %s565_s12  ;;  %v35_v14 = vsel %vm10_vm1, %v462_v10, %v30_v12  ;;  %s111_s20 = smov 3  ;;  %s114_s21 = smov 12  ;;  %v482_v26 = vld [vmem:[%s978_s0 + $0x8c] sm:$0x1]  }
   0x8   :  { %v40_v17 = vsel %vm14_vm2, %v463_v13, %v35_v14  ;;  %v473_v18 = vld [vmem:[%s978_s0 + $0xd] ss:$16 sm:%s85_s8]   ;;  %s119_s23 = smov 48  ;;  %s124_s24 = smov 192  ;;  %v478_v23 = vld [vmem:[%s978_s0 + $0xc] ss:$16 sm:%s111_s20]  }
   0x9   :  { %v474_v19 = vld [vmem:[%s978_s0 + $0xd] ss:$16 sm:%s90_s9]   ;;  %41 = vrot.lane.b32.xlu0 %v40_v17, %s566_s13  ;;  %v88_v20 = vsel %vm6_vm0, %v473_v18, %v472_v16  ;;  %s140_s29 = smov 3  ;;  %s567_s30 = smov 104   ;;  %v488_v37 = vld [vmem:[%s978_s0 + $0x8b] sm:$0x1]  }
   0xa   :  { %v475_v21 = vld [vmem:[%s978_s0 + $0xd] ss:$16 sm:%s95_s15]   ;;  %v93_v22 = vsel %vm10_vm1, %v474_v19, %v88_v20  ;;  %v479_v24 = vld [vmem:[%s978_s0 + $0xc] ss:$16 sm:%s114_s21]   ;;  %s143_s6 = smov 12  ;;  %s148_s7 = smov 48 }
   0xb   :  { %105 = vrot.lane.b32.xlu1 %v476_v15, %s567_s30  ;;  %v98_v25 = vsel %vm14_vm2, %v475_v21, %v93_v22  ;;  %v117_v27 = vsel %vm6_vm0, %v479_v24, %v478_v23  ;;  %v480_v28 = vld [vmem:[%s978_s0 + $0xc] ss:$16 sm:%s119_s23]   ;;  %s153_s12 = smov 192  ;;  %s169_s16 = smov 3  ;;  %v494_v46 = vld [vmem:[%s978_s0 + $0x8a] sm:$0x1]  }
   0xc   :  { %v122_v29 = vsel %vm10_vm1, %v480_v28, %v117_v27  ;;  %v481_v30 = vld [vmem:[%s978_s0 + $0xc] ss:$16 sm:%s124_s24]   ;;  %v484_v31 = vld [vmem:[%s978_s0 + $0xb] ss:$16 sm:%s140_s29]   ;;  %s172_s17 = smov 12  ;;  %s177_s13 = smov 48 }
   0xd   :  { %99 = vrot.lane.b32.xlu0 %v98_v25, %s567_s30  ;;  %v485_v32 = vld [vmem:[%s978_s0 + $0xb] ss:$16 sm:%s143_s6]   ;;  %v127_v33 = vsel %vm14_vm2, %v481_v30, %v122_v29  ;;  %s568_s22 = smov 96   ;;  %s198_s27 = smov 3  ;;  %v500_v54 = vld [vmem:[%s978_s0 + $0x89] sm:$0x1]  }
   0xe   :  { %v146_v34 = vsel %vm6_vm0, %v485_v32, %v484_v31  ;;  %v486_v35 = vld [vmem:[%s978_s0 + $0xb] ss:$16 sm:%s148_s7]   ;;  %v490_v39 = vld [vmem:[%s978_s0 + $0xa] ss:$16 sm:%s169_s16]   ;;  %s182_s3 = smov 192  ;;  %s201_s4 = smov 12 }
   0xf   :  { %v487_v36 = vld [vmem:[%s978_s0 + $0xb] ss:$16 sm:%s153_s12]   ;;  %134 = vrot.lane.b32.xlu1 %v482_v26, %s568_s22  ;;  %v151_v38 = vsel %vm10_vm1, %v486_v35, %v146_v34  ;;  %s206_s5 = smov 48  ;;  %s227_s10 = smov 3  ;;  %v506_v62 = vld [vmem:[%s978_s0 + $0x88] sm:$0x1]  }
  0x10   :  { %v491_v40 = vld [vmem:[%s978_s0 + $0xa] ss:$16 sm:%s172_s17]   ;;  %v156_v43 = vsel %vm14_vm2, %v487_v36, %v151_v38  ;;  %v496_v44 = vld [vmem:[%s978_s0 + $0x9] ss:$16 sm:%s198_s27]   ;;  %s230_s11 = smov 12  ;;  %s569_s12 = smov 88  }
  0x11   :  { %v492_v41 = vld [vmem:[%s978_s0 + $0xa] ss:$16 sm:%s177_s13]   ;;  %128 = vrot.lane.b32.xlu0 %v127_v33, %s568_s22  ;;  %v175_v42 = vsel %vm6_vm0, %v491_v40, %v490_v39  ;;  %s211_s20 = smov 192  ;;  %s235_s24 = smov 48  ;;  %v512_v6 = vld [vmem:[%s978_s0 + $0x87] sm:$0x1]  }
  0x12   :  { %v497_v45 = vld [vmem:[%s978_s0 + $0x9] ss:$16 sm:%s201_s4]   ;;  %v180_v47 = vsel %vm10_vm1, %v492_v41, %v175_v42  ;;  %v493_v48 = vld [vmem:[%s978_s0 + $0xa] ss:$16 sm:%s182_s3]   ;;  %s256_s25 = smov 3  ;;  %s259_s26 = smov 12 }
  0x13   :  { %163 = vrot.lane.b32.xlu1 %v488_v37, %s569_s12  ;;  %v204_v49 = vsel %vm6_vm0, %v497_v45, %v496_v44  ;;  %v498_v50 = vld [vmem:[%s978_s0 + $0x9] ss:$16 sm:%s206_s5]   ;;  %v185_v53 = vsel %vm14_vm2, %v493_v48, %v180_v47  ;;  %s570_s27 = smov 80   ;;  %s240_s5 = smov 192  ;;  %v458_v9 = vld [vmem:[%s978_s0 + $0x80] sm:$0x1]  }
  0x14   :  { %v502_v51 = vld [vmem:[%s978_s0 + $0x8] ss:$16 sm:%s227_s10]   ;;  %v209_v55 = vsel %vm10_vm1, %v498_v50, %v204_v49  ;;  %v499_v56 = vld [vmem:[%s978_s0 + $0x9] ss:$16 sm:%s211_s20]   ;;  %s264_s10 = smov 48  ;;  %s571_s14 = smov 72  }
  0x15   :  { %157 = vrot.lane.b32.xlu0 %v156_v43, %s569_s12  ;;  %v503_v52 = vld [vmem:[%s978_s0 + $0x8] ss:$16 sm:%s230_s11]   ;;  %s285_s11 = smov 3  ;;  %v214_v61 = vsel %vm14_vm2, %v499_v56, %v209_v55  ;;  %s288_s12 = smov 12  ;;  %459 = vst.msk [vmem:[%s979_s1 + $0x8] sm:$0x1] %vm16_vm3, %v458_v9  }
  0x16   :  { %v233_v57 = vsel %vm6_vm0, %v503_v52, %v502_v51  ;;  %v504_v58 = vld [vmem:[%s978_s0 + $0x8] ss:$16 sm:%s235_s24]   ;;  %v508_v59 = vld [vmem:[%s978_s0 + $0x7] ss:$16 sm:%s256_s25]   ;;  %s269_s21 = smov 192  ;;  %s293_s25 = smov 48 }
  0x17   :  { %192 = vrot.lane.b32.xlu1 %v494_v46, %s570_s27  ;;  %v509_v60 = vld [vmem:[%s978_s0 + $0x7] ss:$16 sm:%s259_s26]   ;;  %v238_v63 = vsel %vm10_vm1, %v504_v58, %v233_v57  ;;  %s314_s26 = smov 3  ;;  %s317_s29 = smov 12  ;;  %v518_v15 = vld [vmem:[%s978_s0 + $0x86] sm:$0x1]  }
  0x18   :  { %v505_v0 = vld [vmem:[%s978_s0 + $0x8] ss:$16 sm:%s240_s5]   ;;  %v262_v1 = vsel %vm6_vm0, %v509_v60, %v508_v59  ;;  %v510_v2 = vld [vmem:[%s978_s0 + $0x7] ss:$16 sm:%s264_s10]   ;;  %s572_s30 = smov 64   ;;  %s298_s8 = smov 192 }
  0x19   :  { %186 = vrot.lane.b32.xlu0 %v185_v53, %s570_s27  ;;  %v514_v3 = vld [vmem:[%s978_s0 + $0x6] ss:$16 sm:%s285_s11]   ;;  %v243_v5 = vsel %vm14_vm2, %v505_v0, %v238_v63  ;;  %v267_v7 = vsel %vm10_vm1, %v510_v2, %v262_v1  ;;  %s322_s16 = smov 48  ;;  %s343_s17 = smov 3  ;;  %v524_v23 = vld [vmem:[%s978_s0 + $0x85] sm:$0x1]  }
  0x1a   :  { %v515_v4 = vld [vmem:[%s978_s0 + $0x6] ss:$16 sm:%s288_s12]   ;;  %v511_v8 = vld [vmem:[%s978_s0 + $0x7] ss:$16 sm:%s269_s21]   ;;  %s346_s18 = smov 12  ;;  %s573_s19 = smov 56  }
  0x1b   :  { %221 = vrot.lane.b32.xlu1 %v500_v54, %s571_s14  ;;  %v291_v10 = vsel %vm6_vm0, %v515_v4, %v514_v3  ;;  %v516_v11 = vld [vmem:[%s978_s0 + $0x6] ss:$16 sm:%s293_s25]   ;;  %v272_v14 = vsel %vm14_vm2, %v511_v8, %v267_v7  ;;  %s327_s25 = smov 192  ;;  %s351_s28 = smov 48  ;;  %v530_v35 = vld [vmem:[%s978_s0 + $0x84] sm:$0x1]  }
  0x1c   :  { %v520_v12 = vld [vmem:[%s978_s0 + $0x5] ss:$16 sm:%s314_s26]   ;;  %v296_v16 = vsel %vm10_vm1, %v516_v11, %v291_v10  ;;  %v517_v17 = vld [vmem:[%s978_s0 + $0x6] ss:$16 sm:%s298_s8]   ;;  %s356_s2 = smov 192  ;;  %s372_s3 = smov 3 }
  0x1d   :  { %215 = vrot.lane.b32.xlu0 %v214_v61, %s571_s14  ;;  %v521_v13 = vld [vmem:[%s978_s0 + $0x5] ss:$16 sm:%s317_s29]   ;;  %v301_v22 = vsel %vm14_vm2, %v517_v17, %v296_v16  ;;  %s375_s4 = smov 12  ;;  %s380_s5 = smov 48  ;;  %v536_v46 = vld [vmem:[%s978_s0 + $0x83] sm:$0x1]  }
  0x1e   :  { %v320_v18 = vsel %vm6_vm0, %v521_v13, %v520_v12  ;;  %v522_v19 = vld [vmem:[%s978_s0 + $0x5] ss:$16 sm:%s322_s16]   ;;  %v526_v20 = vld [vmem:[%s978_s0 + $0x4] ss:$16 sm:%s343_s17]   ;;  %s574_s6 = smov 48   ;;  %s2_s11 = smov 3 }
  0x1f   :  { %250 = vrot.lane.b32.xlu1 %v506_v62, %s572_s30  ;;  %v527_v21 = vld [vmem:[%s978_s0 + $0x4] ss:$16 sm:%s346_s18]   ;;  %v325_v24 = vsel %vm10_vm1, %v522_v19, %v320_v18  ;;  %s4_s12 = smov 12  ;;  %s8_s18 = smov 48  ;;  %v542_v56 = vld [vmem:[%s978_s0 + $0x82] sm:$0x1]  }
  0x20   :  { %v523_v25 = vld [vmem:[%s978_s0 + $0x5] ss:$16 sm:%s327_s25]   ;;  %v349_v26 = vsel %vm6_vm0, %v527_v21, %v526_v20  ;;  %v528_v27 = vld [vmem:[%s978_s0 + $0x4] ss:$16 sm:%s351_s28]   ;;  %s401_s22 = smov 3  ;;  %s12_s23 = smov 192 }
  0x21   :  { %244 = vrot.lane.b32.xlu0 %v243_v5, %s572_s30  ;;  %v532_v28 = vld [vmem:[%s978_s0 + $0x3] ss:$16 sm:%s372_s3]   ;;  %v330_v31 = vsel %vm14_vm2, %v523_v25, %v325_v24  ;;  %s404_s26 = smov 12  ;;  %v354_v36 = vsel %vm10_vm1, %v528_v27, %v349_v26  ;;  %s385_s7 = smov 192  ;;  %v548_v62 = vld [vmem:[%s978_s0 + $0x81] sm:$0x1]  }
  0x22   :  { %v529_v29 = vld [vmem:[%s978_s0 + $0x4] ss:$16 sm:%s356_s2]   ;;  %v533_v30 = vld [vmem:[%s978_s0 + $0x3] ss:$16 sm:%s375_s4]   ;;  %s575_s2 = smov 40   ;;  %s409_s15 = smov 48 }
  0x23   :  { %279 = vrot.lane.b32.xlu1 %v512_v6, %s573_s19  ;;  %v534_v32 = vld [vmem:[%s978_s0 + $0x3] ss:$16 sm:%s380_s5]   ;;  %v378_v39 = vsel %vm6_vm0, %v533_v30, %v532_v28  ;;  %s430_s16 = smov 3  ;;  %v359_v45 = vsel %vm14_vm2, %v529_v29, %v354_v36  ;;  %s433_s17 = smov 12  ;;  %vm101_vm6 = vcmask 917312   ;;  %vm130_vm7 = vcmask 851712  }
  0x24   :  { %v3_v33 = vld [vmem:[%s978_s0] ss:$16 sm:%s2_s11]   ;;  %v538_v40 = vld [vmem:[%s978_s0 + $0x2] ss:$16 sm:%s401_s22]   ;;  %s576_s20 = smov 32   ;;  %v383_v47 = vsel %vm10_vm1, %v534_v32, %v378_v39  ;;  %s577_s3 = smov 24  }
  0x25   :  { %273 = vrot.lane.b32.xlu0 %v272_v14, %s573_s19  ;;  %v5_v34 = vld [vmem:[%s978_s0] ss:$16 sm:%s4_s12]   ;;  %s443_s10 = smov 192  ;;  %s578_s11 = smov 16   ;;  %vm159_vm8 = vcmask 786112   ;;  %vm188_vm9 = vcmask 720512  }
  0x26   :  { %v7_v37 = vsel %vm6_vm0, %v5_v34, %v3_v33  ;;  %v9_v38 = vld [vmem:[%s978_s0] ss:$16 sm:%s8_s18]   ;;  %v539_v43 = vld [vmem:[%s978_s0 + $0x2] ss:$16 sm:%s404_s26]   ;;  %s414_s26 = smov 192  ;;  %vm217_vm10 = vcmask 654912  }
  0x27   :  { %308 = vrot.lane.b32.xlu1 %v518_v15, %s574_s6  ;;  %v11_v41 = vsel %vm10_vm1, %v9_v38, %v7_v37  ;;  %v13_v42 = vld [vmem:[%s978_s0] ss:$16 sm:%s12_s23]   ;;  %v407_v49 = vsel %vm6_vm0, %v539_v43, %v538_v40  ;;  %vm246_vm11 = vcmask 589312   ;;  %vm275_vm12 = vcmask 523712  }
  0x28   :  { %v15_v44 = vsel %vm14_vm2, %v13_v42, %v11_v41  ;;  %v535_v48 = vld [vmem:[%s978_s0 + $0x3] ss:$16 sm:%s385_s7]   ;;  %v540_v50 = vld [vmem:[%s978_s0 + $0x2] ss:$16 sm:%s409_s15]   ;;  %vm304_vm13 = vcmask 458112   ;;  %vm333_vm14 = vcmask 392512  }
  0x29   :  { %302 = vrot.lane.b32.xlu0 %v301_v22, %s574_s6  ;;  %17 = vst.msk [vmem:[%s979_s1] sm:$0xff] %vm16_vm3, %v15_v44   ;;  %v544_v51 = vld [vmem:[%s978_s0 + $0x1] ss:$16 sm:%s430_s16]   ;;  %v388_v53 = vsel %vm14_vm2, %v535_v48, %v383_v47  ;;  %v412_v54 = vsel %vm10_vm1, %v540_v50, %v407_v49  ;;  %vm362_vm15 = vcmask 326912  }
  0x2a   :  { %v545_v52 = vld [vmem:[%s978_s0 + $0x1] ss:$16 sm:%s433_s17]   ;;  %v541_v55 = vld [vmem:[%s978_s0 + $0x2] ss:$16 sm:%s414_s26]  }
  0x2b   :  { %337 = vrot.lane.b32.xlu1 %v524_v23, %s575_s2  ;;  %v436_v57 = vsel %vm6_vm0, %v545_v52, %v544_v51  ;;  %v417_v59 = vsel %vm14_vm2, %v541_v55, %v412_v54  ;;  %v547_v61 = vld [vmem:[%s978_s0 + $0x1] ss:$16 sm:%s443_s10]   ;;  %vm391_vm0 = vcmask 261312  }
  0x2d   :  { %331 = vrot.lane.b32.xlu0 %v330_v31, %s575_s2  ;;  %s438_s2 = smov 48 }
  0x2e   :  { %v546_v58 = vld [vmem:[%s978_s0 + $0x1] ss:$16 sm:%s438_s2]   ;;  %s579_s0 = smov 8  }
  0x2f   :  { %366 = vrot.lane.b32.xlu1 %v530_v35, %s576_s20  ;;  %v441_v60 = vsel %vm10_vm1, %v546_v58, %v436_v57  ;;  %vm420_vm1 = vcmask 195712  }
  0x30   :  { %v446_v63 = vsel %vm14_vm2, %v547_v61, %v441_v60  ;;  %vm449_vm2 = vcmask 130112  }
  0x31   :  { %360 = vrot.lane.b32.xlu0 %v359_v45, %s576_s20 }
  0x33   :  { %395 = vrot.lane.b32.xlu1 %v536_v46, %s577_s3 }
  0x35   :  { %389 = vrot.lane.b32.xlu0 %v388_v53, %s577_s3 }
  0x37   :  { %424 = vrot.lane.b32.xlu1 %v542_v56, %s578_s11 }
  0x39   :  { %418 = vrot.lane.b32.xlu0 %v417_v59, %s578_s11 }
  0x3b   :  { %453 = vrot.lane.b32.xlu1 %v548_v62, %s579_s0 }
  0x3d   :  { %447 = vrot.lane.b32.xlu0 %v446_v63, %s579_s0 }
  0x74   :  { %v77_v0 = vpop.permute.xlu1 %76   ;;  %v48_v1 = vpop.permute.xlu0 %47  }
  0x75   :  { %465 = vst.msk [vmem:[%s979_s1 + $0x8] sm:$0x1] %vm43_vm4, %v48_v1  }
  0x76   :  { %471 = vst.msk [vmem:[%s979_s1 + $0x8] sm:$0x1] %vm72_vm5, %v77_v0  }
  0x79   :  { %v71_v2 = vpop.permute.xlu1 %70  }
  0x7b   :  { %v42_v3 = vpop.permute.xlu0 %41  }
  0x7c   :  { %44 = vst.msk [vmem:[%s979_s1] sm:$0xff] %vm43_vm4, %v42_v3  }
  0x7d   :  { %73 = vst.msk [vmem:[%s979_s1] sm:$0xff] %vm72_vm5, %v71_v2   ;;  %v106_v4 = vpop.permute.xlu1 %105  }
  0x7e   :  { %477 = vst.msk [vmem:[%s979_s1 + $0x8] sm:$0x1] %vm101_vm6, %v106_v4  }
  0x7f   :  { %v100_v5 = vpop.permute.xlu0 %99  }
  0x80   :  { %102 = vst.msk [vmem:[%s979_s1] sm:$0xff] %vm101_vm6, %v100_v5  }
  0x81   :  { %v135_v6 = vpop.permute.xlu1 %134  }
  0x82   :  { %483 = vst.msk [vmem:[%s979_s1 + $0x8] sm:$0x1] %vm130_vm7, %v135_v6  }
  0x83   :  { %v129_v7 = vpop.permute.xlu0 %128  }
  0x84   :  { %131 = vst.msk [vmem:[%s979_s1] sm:$0xff] %vm130_vm7, %v129_v7  }
  0x85   :  { %v164_v8 = vpop.permute.xlu1 %163  }
  0x86   :  { %489 = vst.msk [vmem:[%s979_s1 + $0x8] sm:$0x1] %vm159_vm8, %v164_v8  }
  0x87   :  { %v158_v9 = vpop.permute.xlu0 %157  }
  0x88   :  { %160 = vst.msk [vmem:[%s979_s1] sm:$0xff] %vm159_vm8, %v158_v9  }
  0x89   :  { %v193_v10 = vpop.permute.xlu1 %192  }
  0x8a   :  { %495 = vst.msk [vmem:[%s979_s1 + $0x8] sm:$0x1] %vm188_vm9, %v193_v10  }
  0x8b   :  { %v187_v11 = vpop.permute.xlu0 %186  }
  0x8c   :  { %189 = vst.msk [vmem:[%s979_s1] sm:$0xff] %vm188_vm9, %v187_v11  }
  0x8d   :  { %v222_v12 = vpop.permute.xlu1 %221  }
  0x8e   :  { %501 = vst.msk [vmem:[%s979_s1 + $0x8] sm:$0x1] %vm217_vm10, %v222_v12  }
  0x8f   :  { %v216_v13 = vpop.permute.xlu0 %215  }
  0x90   :  { %218 = vst.msk [vmem:[%s979_s1] sm:$0xff] %vm217_vm10, %v216_v13  }
  0x91   :  { %v251_v14 = vpop.permute.xlu1 %250  }
  0x92   :  { %507 = vst.msk [vmem:[%s979_s1 + $0x8] sm:$0x1] %vm246_vm11, %v251_v14  }
  0x93   :  { %v245_v15 = vpop.permute.xlu0 %244  }
  0x94   :  { %247 = vst.msk [vmem:[%s979_s1] sm:$0xff] %vm246_vm11, %v245_v15  }
  0x95   :  { %v280_v16 = vpop.permute.xlu1 %279  }
  0x96   :  { %513 = vst.msk [vmem:[%s979_s1 + $0x8] sm:$0x1] %vm275_vm12, %v280_v16  }
  0x97   :  { %v274_v17 = vpop.permute.xlu0 %273  }
  0x98   :  { %276 = vst.msk [vmem:[%s979_s1] sm:$0xff] %vm275_vm12, %v274_v17  }
  0x99   :  { %v309_v18 = vpop.permute.xlu1 %308  }
  0x9a   :  { %519 = vst.msk [vmem:[%s979_s1 + $0x8] sm:$0x1] %vm304_vm13, %v309_v18  }
  0x9b   :  { %v303_v19 = vpop.permute.xlu0 %302  }
  0x9c   :  { %305 = vst.msk [vmem:[%s979_s1] sm:$0xff] %vm304_vm13, %v303_v19  }
  0x9d   :  { %v338_v20 = vpop.permute.xlu1 %337  }
  0x9e   :  { %525 = vst.msk [vmem:[%s979_s1 + $0x8] sm:$0x1] %vm333_vm14, %v338_v20  }
  0x9f   :  { %v332_v21 = vpop.permute.xlu0 %331  }
  0xa0   :  { %334 = vst.msk [vmem:[%s979_s1] sm:$0xff] %vm333_vm14, %v332_v21  }
  0xa1   :  { %v367_v22 = vpop.permute.xlu1 %366  }
  0xa2   :  { %531 = vst.msk [vmem:[%s979_s1 + $0x8] sm:$0x1] %vm362_vm15, %v367_v22  }
  0xa3   :  { %v361_v23 = vpop.permute.xlu0 %360  }
  0xa4   :  { %363 = vst.msk [vmem:[%s979_s1] sm:$0xff] %vm362_vm15, %v361_v23  }
  0xa5   :  { %v396_v24 = vpop.permute.xlu1 %395  }
  0xa6   :  { %537 = vst.msk [vmem:[%s979_s1 + $0x8] sm:$0x1] %vm391_vm0, %v396_v24  }
  0xa7   :  { %v390_v25 = vpop.permute.xlu0 %389  }
  0xa8   :  { %392 = vst.msk [vmem:[%s979_s1] sm:$0xff] %vm391_vm0, %v390_v25  }
  0xa9   :  { %v425_v26 = vpop.permute.xlu1 %424  }
  0xaa   :  { %543 = vst.msk [vmem:[%s979_s1 + $0x8] sm:$0x1] %vm420_vm1, %v425_v26  }
  0xab   :  { %v419_v27 = vpop.permute.xlu0 %418  }
  0xac   :  { %421 = vst.msk [vmem:[%s979_s1] sm:$0xff] %vm420_vm1, %v419_v27  }
  0xad   :  { %v454_v28 = vpop.permute.xlu1 %453  }
  0xae   :  { %549 = vst.msk [vmem:[%s979_s1 + $0x8] sm:$0x1] %vm449_vm2, %v454_v28  }
  0xaf   :  { %v448_v29 = vpop.permute.xlu0 %447  }
  0xb0   :  { %450 = vst.msk [vmem:[%s979_s1] sm:$0xff] %vm449_vm2, %v448_v29  }

// kernel: tile.218
= control target key start
LH: loop header
LB: loop body
LE: loop exit
PB: predicated region body
PF: predicated region fallthrough
CT: control target
= control target key end

     0   :  { %s28_s0 = inlined_call_operand.vmem [shape: f32[8], index: 0, kind: input, shape index: {}]   ;;  %s29_s1 = inlined_call_operand.vmem [shape: f32[16,8], index: 1, kind: output, shape index: {}]  }
   0x1   :  { %v4_v0 = vld [vmem:[%s28_s0] ss:$0 sm:$0xff] }
   0x2   :  { %5 = vst [vmem:[%s29_s1] sm:$0xff] %v4_v0  ;;  %8 = vst [vmem:[%s29_s1 + $0x8] sm:$0xff] %v4_v0 }

// kernel: tile.259
= control target key start
LH: loop header
LB: loop body
LE: loop exit
PB: predicated region body
PF: predicated region fallthrough
CT: control target
= control target key end

     0   :  { %s131_s10 = smov 120   ;;  %s132_s11 = smov 104   ;;  %vm3_vm0 = vcmask 64512   ;;  %vm9_vm1 = vcmask 1048512   ;;  %vm15_vm2 = vcmask 982912   ;;  %vm21_vm3 = vcmask 917312   ;;  %s207_s0 = inlined_call_operand.vmem [shape: f32[16,8], index: 0, kind: input, shape index: {}]   ;;  %s208_s1 = inlined_call_operand.vmem [shape: f32[1,128], index: 1, kind: output, shape index: {}]  }
   0x1   :  { %v101_v0 = vld [vmem:[%s207_s0 + $0xf] sm:$0x1]   ;;  %v103_v1 = vld [vmem:[%s207_s0 + $0xd] sm:$0x1]   ;;  %v102_v2 = vld [vmem:[%s207_s0 + $0xe] sm:$0x1]  }
   0x2   :  { %7 = vrot.lane.b32.xlu0 %v101_v0, %s131_s10  ;;  %19 = vrot.lane.b32.xlu1 %v103_v1, %s132_s11  ;;  %v104_v3 = vld [vmem:[%s207_s0 + $0xc] sm:$0x1]   ;;  %s133_s16 = smov 112   ;;  %s134_s17 = smov 96   ;;  %v105_v4 = vld [vmem:[%s207_s0 + $0xb] sm:$0x1]  }
   0x3   :  { %v106_v5 = vld [vmem:[%s207_s0 + $0xa] sm:$0x1]   ;;  %v2_v6 = vld [vmem:[%s207_s0] sm:$0x1]   ;;  %s135_s24 = smov 88   ;;  %s136_s25 = smov 80  }
   0x4   :  { %4 = vst.msk [vmem:[#allocation0] sm:$0x1] %vm3_vm0, %v2_v6   ;;  %v107_v7 = vld [vmem:[%s207_s0 + $0x9] sm:$0x1]   ;;  %v108_v8 = vld [vmem:[%s207_s0 + $0x8] sm:$0x1]  }
   0x5   :  { %s137_s30 = smov 72   ;;  %s138_s2 = smov 64   ;;  %v109_v9 = vld [vmem:[%s207_s0 + $0x7] sm:$0x1]   ;;  %v110_v10 = vld [vmem:[%s207_s0 + $0x6] sm:$0x1]  }
   0x6   :  { %13 = vrot.lane.b32.xlu0 %v102_v2, %s133_s16  ;;  %25 = vrot.lane.b32.xlu1 %v104_v3, %s134_s17  ;;  %s139_s7 = smov 56   ;;  %s140_s8 = smov 48   ;;  %v111_v11 = vld [vmem:[%s207_s0 + $0x5] sm:$0x1]   ;;  %v112_v12 = vld [vmem:[%s207_s0 + $0x4] sm:$0x1]  }
   0x7   :  { %s141_s13 = smov 40   ;;  %s142_s14 = smov 32   ;;  %v113_v13 = vld [vmem:[%s207_s0 + $0x3] sm:$0x1]   ;;  %v114_v14 = vld [vmem:[%s207_s0 + $0x2] sm:$0x1]  }
   0x8   :  { %s143_s19 = smov 24   ;;  %s144_s20 = smov 16   ;;  %v115_v15 = vld [vmem:[%s207_s0 + $0x1] sm:$0x1]   ;;  %vm27_vm4 = vcmask 851712   ;;  %vm33_vm5 = vcmask 786112  }
   0x9   :  { %s145_s0 = smov 8   ;;  %vm39_vm6 = vcmask 720512   ;;  %vm45_vm7 = vcmask 654912   ;;  %vm51_vm8 = vcmask 589312   ;;  %vm57_vm9 = vcmask 523712  }
   0xa   :  { %31 = vrot.lane.b32.xlu0 %v105_v4, %s135_s24  ;;  %37 = vrot.lane.b32.xlu1 %v106_v5, %s136_s25  ;;  %vm63_vm10 = vcmask 458112   ;;  %vm69_vm11 = vcmask 392512   ;;  %vm75_vm12 = vcmask 326912   ;;  %vm81_vm13 = vcmask 261312  }
   0xb   :  { %vm87_vm14 = vcmask 195712   ;;  %vm93_vm15 = vcmask 130112  }
   0xe   :  { %43 = vrot.lane.b32.xlu0 %v107_v7, %s137_s30  ;;  %49 = vrot.lane.b32.xlu1 %v108_v8, %s138_s2 }
  0x12   :  { %55 = vrot.lane.b32.xlu0 %v109_v9, %s139_s7  ;;  %61 = vrot.lane.b32.xlu1 %v110_v10, %s140_s8 }
  0x16   :  { %67 = vrot.lane.b32.xlu0 %v111_v11, %s141_s13  ;;  %73 = vrot.lane.b32.xlu1 %v112_v12, %s142_s14 }
  0x1a   :  { %79 = vrot.lane.b32.xlu0 %v113_v13, %s143_s19  ;;  %85 = vrot.lane.b32.xlu1 %v114_v14, %s144_s20 }
  0x1e   :  { %91 = vrot.lane.b32.xlu0 %v115_v15, %s145_s0 }
  0x74   :  { %v8_v16 = vpop.permute.xlu0 %7   ;;  %v20_v17 = vpop.permute.xlu1 %19  }
  0x75   :  { %10 = vst.msk [vmem:[#allocation0] sm:$0x1] %vm9_vm1, %v8_v16  }
  0x78   :  { %v14_v18 = vpop.permute.xlu0 %13   ;;  %v26_v19 = vpop.permute.xlu1 %25  }
  0x79   :  { %16 = vst.msk [vmem:[#allocation0] sm:$0x1] %vm15_vm2, %v14_v18  }
  0x7a   :  { %22 = vst.msk [vmem:[#allocation0] sm:$0x1] %vm21_vm3, %v20_v17  }
  0x7b   :  { %28 = vst.msk [vmem:[#allocation0] sm:$0x1] %vm27_vm4, %v26_v19  }
  0x7c   :  { %v32_v20 = vpop.permute.xlu0 %31   ;;  %v38_v21 = vpop.permute.xlu1 %37  }
  0x7d   :  { %34 = vst.msk [vmem:[#allocation0] sm:$0x1] %vm33_vm5, %v32_v20  }
  0x7e   :  { %40 = vst.msk [vmem:[#allocation0] sm:$0x1] %vm39_vm6, %v38_v21  }
  0x80   :  { %v44_v22 = vpop.permute.xlu0 %43   ;;  %v50_v23 = vpop.permute.xlu1 %49  }
  0x81   :  { %46 = vst.msk [vmem:[#allocation0] sm:$0x1] %vm45_vm7, %v44_v22  }
  0x82   :  { %52 = vst.msk [vmem:[#allocation0] sm:$0x1] %vm51_vm8, %v50_v23  }
  0x84   :  { %v56_v24 = vpop.permute.xlu0 %55   ;;  %v62_v25 = vpop.permute.xlu1 %61  }
  0x85   :  { %58 = vst.msk [vmem:[#allocation0] sm:$0x1] %vm57_vm9, %v56_v24  }
  0x86   :  { %64 = vst.msk [vmem:[#allocation0] sm:$0x1] %vm63_vm10, %v62_v25  }
  0x88   :  { %v68_v26 = vpop.permute.xlu0 %67   ;;  %v74_v27 = vpop.permute.xlu1 %73  }
  0x89   :  { %70 = vst.msk [vmem:[#allocation0] sm:$0x1] %vm69_vm11, %v68_v26  }
  0x8a   :  { %76 = vst.msk [vmem:[#allocation0] sm:$0x1] %vm75_vm12, %v74_v27  }
  0x8c   :  { %v80_v28 = vpop.permute.xlu0 %79   ;;  %v86_v29 = vpop.permute.xlu1 %85  }
  0x8d   :  { %82 = vst.msk [vmem:[#allocation0] sm:$0x1] %vm81_vm13, %v80_v28  }
  0x8e   :  { %88 = vst.msk [vmem:[#allocation0] sm:$0x1] %vm87_vm14, %v86_v29  }
  0x90   :  { %v92_v30 = vpop.permute.xlu0 %91  }
  0x91   :  { %94 = vst.msk [vmem:[#allocation0] sm:$0x1] %vm93_vm15, %v92_v30  }
  0x98   :  { %v98_v31 = vld [vmem:[#allocation0] sm:$0x1] }
  0x99   :  { %100 = vst [vmem:[%s208_s1] sm:$0x1] %v98_v31 }

// kernel: block_forward.1
= control target key start
LH: loop header
LB: loop body
LE: loop exit
PB: predicated region body
PF: predicated region fallthrough
CT: control target
= control target key end

     0   :  { %v28_v0 = vlaneseq  ;;  %vm101_vm0 = vcmask 1040384   ;;  %s1368_s17 = smov 8   ;;  %v2799_v19 = vmov 0  ;;  %v2802_v22 = vmov 0  ;;  %s1369_s18 = smov 120   ;;  %s2788_s0 = inlined_call_operand.vmem [shape: f32[32,128], index: 0, kind: input, shape index: {}]   ;;  %s2789_s1 = inlined_call_operand.vmem [shape: f32[64,128], index: 1, kind: input, shape index: {}]   ;;  %s2790_s2 = inlined_call_operand.vmem [shape: f32[32,128], index: 2, kind: output, shape index: {}]  }
   0x1   :  { %v1402_v1 = vld [vmem:[%s2788_s0 + $0x10] sm:$0xff]  ;;  %v1407_v2 = vld [vmem:[%s2788_s0 + $0x18] sm:$0xff]  ;;  %v1412_v3 = vld [vmem:[%s2788_s0] sm:$0xff]  ;;  %vm118_vm3 = vcmask 1046528   ;;  %v2805_v31 = vmov 0  ;;  %v2808_v37 = vmov 0 }
   0x2   :  { %v1415_v4 = vmax.f32 %v1402_v1, 0.0  ;;  %v1418_v5 = vmax.f32 %v1407_v2, 0.0  ;;  %v1423_v6 = vld [vmem:[%s2788_s0 + $0x8] sm:$0xff]  ;;  %v1426_v7 = vmax.f32 %v1412_v3, 0.0  ;;  %v1432_v9 = vshrl.u32 %v28_v0, 7  ;;  %s1370_s19 = smov 125  }
   0x3   :  { %v1429_v8 = vmax.f32 %v1423_v6, 0.0  ;;  %s1371_s20 = smov 126   ;;  %v1563_v47 = vand.u32 127, %v28_v0  ;;  %v1576_v52 = vld [vmem:[%s2789_s1] sm:$0xff]  ;;  %s1372_s25 = smov 127  }
   0x4   :  { %v105_v10 = vrot.slane %v1415_v4, 7  ;;  %v107_v11 = vrot.slane %v1418_v5, 7  ;;  %v102_v12 = vrot.slane %v1426_v7, 7  ;;  %v39_v14 = vand.u32 15, %v1432_v9  ;;  %s1373_s26 = smov 1   ;;  %s1374_s27 = smov 2  }
   0x5   :  { %v103_v13 = vrot.slane %v1429_v8, 7  ;;  %v33_v15 = vadd.s32 16, %v1432_v9  ;;  %v32_v25 = vadd.s32 8, %v1432_v9  ;;  %v120_v27 = vrot.slane %v1429_v8, 1  ;;  %s1375_s28 = smov 3   ;;  %s1376_s29 = smov 4  }
   0x6   :  { %v1441_v16 = vsel %vm101_vm0, %v105_v10, %v107_v11  ;;  %v113_v17 = vsel %vm101_vm0, %v1426_v7, %v102_v12  ;;  %vm1450_vm1 = vcmp.eq.s32.totalorder %v39_v14, 0  ;;  %v122_v28 = vrot.slane %v1415_v4, 1  ;;  %s1377_s30 = smov 5   ;;  %s1378_s3 = smov 6  }
   0x7   :  { %141 = vrot.lane.b32.xlu1 %v1441_v16, %s1368_s17  ;;  %v1448_v18 = vsel %vm101_vm0, %v102_v12, %v103_v13  ;;  %v2800_v19 = vsel %vm1450_vm1, 4294967295, %v2799_v19  ;;  %v53_v20 = vand.u32 15, %v33_v15  ;;  %v1459_v21 = vsel %vm1450_vm1, %v1426_v7, %v113_v17  ;;  %s1379_s4 = smov 7   ;;  %s1380_s15 = smov 121  }
   0x8   :  { %2801 = vst [vmem:[#allocation2_spill] sm:$0xff] %v2800_v19  ;;  %137 = vrot.lane.b32.xlu0 %v1448_v18, %s1368_s17  ;;  %v106_v23 = vsel %vm101_vm0, %v103_v13, %v105_v10  ;;  %v46_v26 = vand.u32 15, %v32_v25  ;;  %v34_v29 = vadd.s32 24, %v1432_v9  ;;  %v119_v30 = vrot.slane %v1426_v7, 1  ;;  %s1381_s16 = smov 122   ;;  %s1382_s21 = smov 123  }
   0x9   :  { %vm1461_vm2 = vcmp.eq.s32.totalorder %v53_v20, 0  ;;  %v123_v32 = vsel %vm118_vm3, %v120_v27, %v122_v28  ;;  %v124_v34 = vrot.slane %v1418_v5, 1  ;;  %v1566_v49 = vsub.s32 0, %v1432_v9  ;;  %s1383_s22 = smov 124  }
   0xa   :  { %v2803_v22 = vsel %vm1461_vm2, 4294967295, %v2802_v22  ;;  %v1473_v24 = vsel %vm1461_vm2, %v1415_v4, %v106_v23  ;;  %vm1500_vm4 = vcmp.eq.s32.totalorder %v46_v26, 15  ;;  %v60_v33 = vand.u32 15, %v34_v29 }
   0xb   :  { %2804 = vst [vmem:[#allocation3_spill] sm:$0xff] %v2803_v22  ;;  %149 = vrot.lane.b32.xlu1 %v1448_v18, %s1369_s18  ;;  %v2806_v31 = vsel %vm1500_vm4, 4294967295, %v2805_v31  ;;  %v1513_v35 = vsel %vm1500_vm4, %v1429_v8, %v123_v32  ;;  %v1516_v36 = vsel %vm118_vm3, %v119_v30, %v120_v27  ;;  %v130_v38 = vsel %vm118_vm3, %v124_v34, %v1418_v5 }
   0xc   :  { %135 = vrot.lane.b32.xlu0 %v1459_v21, %s1368_s17  ;;  %2807 = vst [vmem:[#allocation4_spill] sm:$0xff] %v2806_v31  ;;  %vm1518_vm5 = vcmp.eq.s32.totalorder %v60_v33, 15  ;;  %v1534_v40 = vsel %vm118_vm3, %v122_v28, %v124_v34  ;;  %v1569_v50 = vsub.s32 1, %v1432_v9  ;;  %vm83_vm6 = vcmp.lt.s32.totalorder %v1563_v47, 8 }
   0xd   :  { %v2809_v37 = vsel %vm1518_vm5, 4294967295, %v2808_v37  ;;  %v1531_v39 = vsel %vm1518_vm5, %v1418_v5, %v130_v38  ;;  %v1580_v53 = vsub.s32 2, %v1432_v9  ;;  %v1587_v56 = vrot.slane %v1576_v52, %v1566_v49 }
   0xe   :  { %2810 = vst [vmem:[#allocation5_spill] sm:$0xff] %v2809_v37  ;;  %v1591_v57 = vrot.slane %v1576_v52, %v1569_v50  ;;  %vm84_vm7 = vcmp.ge.s32.totalorder %v1563_v47, 120  ;;  %v1598_v60 = vsub.s32 3, %v1432_v9  ;;  %v1619_v15 = vsub.s32 4, %v1432_v9 }
   0xf   :  { %139 = vrot.lane.b32.xlu1 %v1473_v24, %s1368_s17  ;;  %v1608_v10 = vrot.slane %v1576_v52, %v1580_v53  ;;  %v1637_v28 = vsub.s32 5, %v1432_v9  ;;  %v1647_v34 = vsub.s32 6, %v1432_v9 }
  0x10   :  { %147 = vrot.lane.b32.xlu0 %v1459_v21, %s1369_s18  ;;  %v171_v61 = vmul.f32 %v1591_v57, %v1459_v21  ;;  %v172_v0 = vmul.f32 %v1591_v57, %v1448_v18  ;;  %v1623_v17 = vrot.slane %v1576_v52, %v1598_v60  ;;  %v1644_v32 = vrot.slane %v1576_v52, %v1619_v15 }
  0x13   :  { %153 = vrot.lane.b32.xlu1 %v1441_v16, %s1369_s18 }
  0x14   :  { %151 = vrot.lane.b32.xlu0 %v1473_v24, %s1369_s18 }
  0x17   :  { %193 = vrot.lane.b32.xlu1 %v1429_v8, %s1368_s17 }
  0x18   :  { %191 = vrot.lane.b32.xlu0 %v1426_v7, %s1368_s17 }
  0x1b   :  { %197 = vrot.lane.b32.xlu1 %v1418_v5, %s1368_s17 }
  0x1c   :  { %195 = vrot.lane.b32.xlu0 %v1415_v4, %s1368_s17 }
  0x1f   :  { %205 = vrot.lane.b32.xlu1 %v1429_v8, %s1369_s18 }
  0x20   :  { %203 = vrot.lane.b32.xlu0 %v1426_v7, %s1369_s18 }
  0x23   :  { %209 = vrot.lane.b32.xlu1 %v1418_v5, %s1369_s18 }
  0x24   :  { %207 = vrot.lane.b32.xlu0 %v1415_v4, %s1369_s18 }
  0x27   :  { %253 = vrot.lane.b32.xlu1 %v1513_v35, %s1368_s17 }
  0x28   :  { %251 = vrot.lane.b32.xlu0 %v1516_v36, %s1368_s17 }
  0x2b   :  { %257 = vrot.lane.b32.xlu1 %v1531_v39, %s1368_s17 }
  0x2c   :  { %255 = vrot.lane.b32.xlu0 %v1534_v40, %s1368_s17 }
  0x2f   :  { %265 = vrot.lane.b32.xlu1 %v1513_v35, %s1369_s18 }
  0x30   :  { %263 = vrot.lane.b32.xlu0 %v1516_v36, %s1369_s18 }
  0x33   :  { %269 = vrot.lane.b32.xlu1 %v1531_v39, %s1369_s18 }
  0x34   :  { %267 = vrot.lane.b32.xlu0 %v1534_v40, %s1369_s18 }
  0x37   :  { %1117 = vrot.lane.b32.xlu1 %v1423_v6, %s1370_s19 }
  0x38   :  { %1115 = vrot.lane.b32.xlu0 %v1412_v3, %s1370_s19 }
  0x3b   :  { %1121 = vrot.lane.b32.xlu1 %v1407_v2, %s1370_s19 }
  0x3c   :  { %1119 = vrot.lane.b32.xlu0 %v1402_v1, %s1370_s19 }
  0x3f   :  { %1133 = vrot.lane.b32.xlu1 %v1423_v6, %s1371_s20 }
  0x40   :  { %1131 = vrot.lane.b32.xlu0 %v1412_v3, %s1371_s20 }
  0x79   :  { %v142_v41 = vpop.permute.xlu1 %141 }
  0x7a   :  { %v138_v42 = vpop.permute.xlu0 %137  ;;  %v146_v20 = vsel %vm83_vm6, %v1441_v16, %v142_v41  ;;  %v174_v41 = vmul.f32 %v1591_v57, %v1441_v16 }
  0x7b   :  { %v144_v58 = vsel %vm83_vm6, %v1448_v18, %v138_v42  ;;  %v166_v38 = vmul.f32 %v1587_v56, %v146_v20 }
  0x7c   :  { %v164_v63 = vmul.f32 %v1587_v56, %v144_v58 }
  0x7d   :  { %v150_v43 = vpop.permute.xlu1 %149 }
  0x7e   :  { %v136_v44 = vpop.permute.xlu0 %135  ;;  %v156_v13 = vsel %vm84_vm7, %v1448_v18, %v150_v43  ;;  %v176_v25 = vadd.f32 %v172_v0, %v164_v63  ;;  %v1674_v63 = vsub.s32 7, %v1432_v9  ;;  %v178_v0 = vadd.f32 %v174_v41, %v166_v38 }
  0x7f   :  { %v143_v54 = vsel %vm83_vm6, %v1459_v21, %v136_v44  ;;  %v184_v26 = vmul.f32 %v1608_v10, %v156_v13 }
  0x80   :  { %v163_v62 = vmul.f32 %v1587_v56, %v143_v54 }
  0x81   :  { %v1560_v45 = vpop.permute.xlu1 %139 }
  0x82   :  { %v148_v46 = vpop.permute.xlu0 %147  ;;  %v175_v23 = vadd.f32 %v171_v61, %v163_v62  ;;  %v1671_v62 = vrot.slane %v1576_v52, %v1647_v34 }
  0x83   :  { %v155_v11 = vsel %vm84_vm7, %v1459_v21, %v148_v46 }
  0x84   :  { %v183_v21 = vmul.f32 %v1608_v10, %v155_v11 }
  0x85   :  { %v154_v48 = vpop.permute.xlu1 %153 }
  0x86   :  { %v1571_v51 = vpop.permute.xlu0 %151  ;;  %v158_v30 = vsel %vm84_vm7, %v1441_v16, %v154_v48  ;;  %v187_v43 = vadd.f32 %v183_v21, %v175_v23  ;;  %v188_v48 = vadd.f32 %v184_v26, %v176_v25  ;;  %v232_v16 = vmul.f32 %v1644_v32, %v1429_v8 }
  0x87   :  { %v186_v54 = vmul.f32 %v1608_v10, %v158_v30 }
  0x89   :  { %v194_v55 = vpop.permute.xlu1 %193  ;;  %v190_v23 = vadd.f32 %v186_v54, %v178_v0 }
  0x8a   :  { %v192_v59 = vpop.permute.xlu0 %191  ;;  %v200_v18 = vsel %vm83_vm6, %v1429_v8, %v194_v55  ;;  %v1660_v55 = vrot.slane %v1576_v52, %v1637_v28 }
  0x8b   :  { %v199_v27 = vsel %vm83_vm6, %v1426_v7, %v192_v59  ;;  %v220_v42 = vmul.f32 %v1623_v17, %v200_v18  ;;  %v234_v18 = vmul.f32 %v1644_v32, %v1418_v5 }
  0x8c   :  { %v219_v44 = vmul.f32 %v1623_v17, %v199_v27 }
  0x8d   :  { %v198_v12 = vpop.permute.xlu1 %197  ;;  %v224_v11 = vadd.f32 %v220_v42, %v188_v48 }
  0x8e   :  { %v1616_v14 = vpop.permute.xlu0 %195  ;;  %v202_v46 = vsel %vm83_vm6, %v1418_v5, %v198_v12  ;;  %v223_v20 = vadd.f32 %v219_v44, %v187_v43 }
  0x8f   :  { %v222_v12 = vmul.f32 %v1623_v17, %v202_v46 }
  0x91   :  { %v206_v29 = vpop.permute.xlu1 %205  ;;  %v226_v30 = vadd.f32 %v222_v12, %v190_v23  ;;  %v1711_v12 = vld [vmem:[%s2789_s1 + $0x8] ss:$0 sm:$0xff] }
  0x92   :  { %v204_v33 = vpop.permute.xlu0 %203  ;;  %v212_v59 = vsel %vm84_vm7, %v1429_v8, %v206_v29  ;;  %v231_v8 = vmul.f32 %v1644_v32, %v1426_v7 }
  0x93   :  { %v211_v13 = vsel %vm84_vm7, %v1426_v7, %v204_v33  ;;  %v244_v21 = vmul.f32 %v1660_v55, %v212_v59  ;;  %v1694_v7 = vrot.slane %v1576_v52, %v1674_v63  ;;  %v236_v33 = vadd.f32 %v232_v16, %v224_v11 }
  0x94   :  { %v243_v25 = vmul.f32 %v1660_v55, %v211_v13  ;;  %v235_v42 = vadd.f32 %v231_v8, %v223_v20 }
  0x95   :  { %v210_v58 = vpop.permute.xlu1 %209  ;;  %v248_v43 = vadd.f32 %v244_v21, %v236_v33  ;;  %v292_v0 = vmul.f32 %v1694_v7, %v1513_v35  ;;  %v291_v13 = vmul.f32 %v1694_v7, %v1516_v36 }
  0x96   :  { %v1667_v61 = vpop.permute.xlu0 %207  ;;  %v214_v26 = vsel %vm84_vm7, %v1418_v5, %v210_v58  ;;  %v247_v48 = vadd.f32 %v243_v25, %v235_v42  ;;  %v238_v58 = vadd.f32 %v234_v18, %v226_v30  ;;  %v294_v18 = vmul.f32 %v1694_v7, %v1531_v39 }
  0x97   :  { %v246_v44 = vmul.f32 %v1660_v55, %v214_v26 }
  0x99   :  { %v254_v9 = vpop.permute.xlu1 %253  ;;  %v250_v20 = vadd.f32 %v246_v44, %v238_v58  ;;  %v173_v44 = vmul.f32 %v1591_v57, %v1473_v24 }
  0x9a   :  { %v260_v27 = vsel %vm83_vm6, %v1513_v35, %v254_v9  ;;  %v252_v29 = vpop.permute.xlu0 %251 }
  0x9b   :  { %v280_v38 = vmul.f32 %v1671_v62, %v260_v27  ;;  %v259_v41 = vsel %vm83_vm6, %v1516_v36, %v252_v29 }
  0x9c   :  { %v279_v5 = vmul.f32 %v1671_v62, %v259_v41 }
  0x9d   :  { %v258_v46 = vpop.permute.xlu1 %257  ;;  %v284_v16 = vadd.f32 %v280_v38, %v248_v43  ;;  %v157_v43 = vsel %vm84_vm7, %v1473_v24, %v1571_v51 }
  0x9e   :  { %v262_v52 = vsel %vm83_vm6, %v1531_v39, %v258_v46  ;;  %v256_v54 = vpop.permute.xlu0 %255  ;;  %v283_v11 = vadd.f32 %v279_v5, %v247_v48  ;;  %v185_v48 = vmul.f32 %v1608_v10, %v157_v43  ;;  %v233_v10 = vmul.f32 %v1644_v32, %v1415_v4 }
  0x9f   :  { %v282_v59 = vmul.f32 %v1671_v62, %v262_v52  ;;  %v296_v25 = vadd.f32 %v292_v0, %v284_v16 }
  0xa0   :  { %v295_v29 = vadd.f32 %v291_v13, %v283_v11 }
  0xa1   :  { %v266_v8 = vpop.permute.xlu1 %265  ;;  %v286_v9 = vadd.f32 %v282_v59, %v250_v20 }
  0xa2   :  { %v272_v23 = vsel %vm84_vm7, %v1513_v35, %v266_v8  ;;  %v264_v21 = vpop.permute.xlu0 %263 }
  0xa3   :  { %v304_v26 = vmul.f32 %v1711_v12, %v272_v23  ;;  %v271_v27 = vsel %vm84_vm7, %v1516_v36, %v264_v21  ;;  %v298_v42 = vadd.f32 %v294_v18, %v286_v9 }
  0xa4   :  { %v303_v30 = vmul.f32 %v1711_v12, %v271_v27 }
  0xa5   :  { %v1725_v33 = vadd.f32 %v304_v26, %v296_v25  ;;  %v270_v38 = vpop.permute.xlu1 %269 }
  0xa6   :  { %v1727_v41 = vadd.f32 %v303_v30, %v295_v29  ;;  %v274_v35 = vsel %vm84_vm7, %v1531_v39, %v270_v38  ;;  %v145_v39 = vsel %vm83_vm6, %v1473_v24, %v1560_v45  ;;  %v201_v45 = vsel %vm83_vm6, %v1415_v4, %v1616_v14  ;;  %v268_v16 = vpop.permute.xlu0 %267 }
  0xa7   :  { %v306_v5 = vmul.f32 %v1711_v12, %v274_v35  ;;  %313 = vrot.lane.b32.xlu1 %v1725_v33, %s1370_s19  ;;  %v165_v46 = vmul.f32 %v1587_v56, %v145_v39  ;;  %v221_v52 = vmul.f32 %v1623_v17, %v201_v45  ;;  %v213_v56 = vsel %vm84_vm7, %v1415_v4, %v1667_v61 }
  0xa8   :  { %311 = vrot.lane.b32.xlu0 %v1727_v41, %s1370_s19  ;;  %v261_v14 = vsel %vm83_vm6, %v1534_v40, %v256_v54  ;;  %v245_v17 = vmul.f32 %v1660_v55, %v213_v56  ;;  %v273_v32 = vsel %vm84_vm7, %v1534_v40, %v268_v16  ;;  %v293_v54 = vmul.f32 %v1694_v7, %v1534_v40 }
  0xa9   :  { %v1737_v36 = vadd.f32 %v306_v5, %v298_v42  ;;  %v177_v51 = vadd.f32 %v173_v44, %v165_v46  ;;  %v281_v58 = vmul.f32 %v1671_v62, %v261_v14  ;;  %v305_v62 = vmul.f32 %v1711_v12, %v273_v32  ;;  %v1865_v7 = vpop.permute.xlu1 %1117  ;;  %v14_v14 = vld [vmem:[%s2789_s1 + $0x11] sm:$0x7] }
  0xaa   :  { %v1863_v40 = vpop.permute.xlu0 %1115  ;;  %v1918_v16 = vrot.slane %v14_v14, %v1566_v49 }
  0xab   :  { %317 = vrot.lane.b32.xlu1 %v1737_v36, %s1370_s19  ;;  %v189_v24 = vadd.f32 %v185_v48, %v177_v51 }
  0xac   :  { %327 = vrot.lane.b32.xlu0 %v1727_v41, %s1371_s20 }
  0xad   :  { %v225_v57 = vadd.f32 %v221_v52, %v189_v24  ;;  %v1869_v12 = vpop.permute.xlu1 %1121 }
  0xae   :  { %v1867_v11 = vpop.permute.xlu0 %1119  ;;  %2812 = vst [vmem:[#allocation7_spill] sm:$0xff] %v1869_v12 }
  0xaf   :  { %329 = vrot.lane.b32.xlu1 %v1725_v33, %s1371_s20  ;;  %v237_v61 = vadd.f32 %v233_v10, %v225_v57  ;;  %2811 = vst [vmem:[#allocation6_spill] sm:$0xff] %v1867_v11 }
  0xb0   :  { %347 = vrot.lane.b32.xlu0 %v1727_v41, %s1372_s25 }
  0xb1   :  { %v249_v4 = vadd.f32 %v245_v17, %v237_v61 }
  0xb2   :  { %v1871_v13 = vpop.permute.xlu0 %1131 }
  0xb3   :  { %333 = vrot.lane.b32.xlu1 %v1737_v36, %s1371_s20  ;;  %v285_v55 = vadd.f32 %v281_v58, %v249_v4 }
  0xb4   :  { %379 = vrot.lane.b32.xlu0 %v1727_v41, %s1373_s26 }
  0xb5   :  { %v297_v59 = vadd.f32 %v293_v54, %v285_v55 }
  0xb7   :  { %349 = vrot.lane.b32.xlu1 %v1725_v33, %s1372_s25  ;;  %v1809_v0 = vadd.f32 %v305_v62, %v297_v59  ;;  %v1922_v62 = vrot.slane %v14_v14, %v1569_v50 }
  0xb8   :  { %399 = vrot.lane.b32.xlu0 %v1727_v41, %s1374_s27 }
  0xbb   :  { %353 = vrot.lane.b32.xlu1 %v1737_v36, %s1372_s25 }
  0xbc   :  { %419 = vrot.lane.b32.xlu0 %v1727_v41, %s1375_s28 }
  0xbf   :  { %381 = vrot.lane.b32.xlu1 %v1725_v33, %s1373_s26 }
  0xc0   :  { %439 = vrot.lane.b32.xlu0 %v1727_v41, %s1376_s29 }
  0xc3   :  { %385 = vrot.lane.b32.xlu1 %v1737_v36, %s1373_s26 }
  0xc4   :  { %459 = vrot.lane.b32.xlu0 %v1727_v41, %s1377_s30 }
  0xc7   :  { %401 = vrot.lane.b32.xlu1 %v1725_v33, %s1374_s27 }
  0xc8   :  { %479 = vrot.lane.b32.xlu0 %v1727_v41, %s1378_s3 }
  0xcb   :  { %405 = vrot.lane.b32.xlu1 %v1737_v36, %s1374_s27 }
  0xcc   :  { %499 = vrot.lane.b32.xlu0 %v1727_v41, %s1379_s4 }
  0xcf   :  { %421 = vrot.lane.b32.xlu1 %v1725_v33, %s1375_s28 }
  0xd0   :  { %315 = vrot.lane.b32.xlu0 %v1809_v0, %s1370_s19 }
  0xd3   :  { %425 = vrot.lane.b32.xlu1 %v1737_v36, %s1375_s28 }
  0xd4   :  { %331 = vrot.lane.b32.xlu0 %v1809_v0, %s1371_s20 }
  0xd7   :  { %441 = vrot.lane.b32.xlu1 %v1725_v33, %s1376_s29 }
  0xd8   :  { %351 = vrot.lane.b32.xlu0 %v1809_v0, %s1372_s25 }
  0xdb   :  { %445 = vrot.lane.b32.xlu1 %v1737_v36, %s1376_s29 }
  0xdc   :  { %383 = vrot.lane.b32.xlu0 %v1809_v0, %s1373_s26 }
  0xdf   :  { %461 = vrot.lane.b32.xlu1 %v1725_v33, %s1377_s30 }
  0xe0   :  { %403 = vrot.lane.b32.xlu0 %v1809_v0, %s1374_s27 }
  0xe3   :  { %465 = vrot.lane.b32.xlu1 %v1737_v36, %s1377_s30 }
  0xe4   :  { %423 = vrot.lane.b32.xlu0 %v1809_v0, %s1375_s28 }
  0xe7   :  { %481 = vrot.lane.b32.xlu1 %v1725_v33, %s1378_s3 }
  0xe8   :  { %443 = vrot.lane.b32.xlu0 %v1809_v0, %s1376_s29 }
  0xeb   :  { %485 = vrot.lane.b32.xlu1 %v1737_v36, %s1378_s3 }
  0xec   :  { %463 = vrot.lane.b32.xlu0 %v1809_v0, %s1377_s30 }
  0xef   :  { %501 = vrot.lane.b32.xlu1 %v1725_v33, %s1379_s4 }
  0xf0   :  { %483 = vrot.lane.b32.xlu0 %v1809_v0, %s1378_s3 }
  0xf3   :  { %505 = vrot.lane.b32.xlu1 %v1737_v36, %s1379_s4 }
  0xf4   :  { %503 = vrot.lane.b32.xlu0 %v1809_v0, %s1379_s4 }
  0xf7   :  { %1137 = vrot.lane.b32.xlu1 %v1407_v2, %s1371_s20 }
  0xf8   :  { %1135 = vrot.lane.b32.xlu0 %v1402_v1, %s1371_s20 }
  0xfb   :  { %1153 = vrot.lane.b32.xlu1 %v1423_v6, %s1372_s25  ;;  %v1873_v6 = vpop.permute.xlu1 %1133 }
  0xfc   :  { %1151 = vrot.lane.b32.xlu0 %v1412_v3, %s1372_s25 }
  0xff   :  { %1157 = vrot.lane.b32.xlu1 %v1407_v2, %s1372_s25 }
 0x100   :  { %1155 = vrot.lane.b32.xlu0 %v1402_v1, %s1372_s25  ;;  %v13_v1 = vld [vmem:[%s2789_s1 + $0x9] sm:$0xff] }
 0x101   :  { %v1883_v18 = vrot.slane %v13_v1, %v1569_v50  ;;  %v1886_v9 = vrot.slane %v13_v1, %v1566_v49  ;;  %v1889_v25 = vrot.slane %v13_v1, %v1580_v53  ;;  %v1895_v39 = vrot.slane %v13_v1, %v1598_v60 }
 0x102   :  { %v1898_v44 = vrot.slane %v13_v1, %v1619_v15  ;;  %v1903_v51 = vrot.slane %v13_v1, %v1637_v28  ;;  %v1907_v56 = vrot.slane %v13_v1, %v1647_v34  ;;  %v1914_v61 = vrot.slane %v13_v1, %v1674_v63 }
 0x103   :  { %v371_v48 = vmul.f32 %v1895_v39, %v1727_v41 }
 0x119   :  { %v1875_v20 = vpop.permute.xlu1 %313 }
 0x11a   :  { %v312_v3 = vpop.permute.xlu0 %311 }
 0x11b   :  { %v323_v30 = vmul.f32 %v1886_v9, %v312_v3 }
 0x11d   :  { %v1877_v8 = vpop.permute.xlu1 %317 }
 0x11e   :  { %v328_v2 = vpop.permute.xlu0 %327 }
 0x11f   :  { %v339_v29 = vmul.f32 %v1883_v18, %v328_v2 }
 0x121   :  { %v330_v23 = vpop.permute.xlu1 %329  ;;  %v343_v5 = vadd.f32 %v339_v29, %v323_v30  ;;  %v1927_v29 = vrot.slane %v14_v14, %v1580_v53 }
 0x122   :  { %v348_v21 = vpop.permute.xlu0 %347 }
 0x123   :  { %v359_v38 = vmul.f32 %v1889_v25, %v348_v21 }
 0x125   :  { %v334_v26 = vpop.permute.xlu1 %333  ;;  %v363_v43 = vadd.f32 %v359_v38, %v343_v5 }
 0x126   :  { %v380_v27 = vpop.permute.xlu0 %379 }
 0x127   :  { %v375_v52 = vadd.f32 %v371_v48, %v363_v43  ;;  %v391_v24 = vmul.f32 %v1898_v44, %v380_v27 }
 0x129   :  { %v350_v35 = vpop.permute.xlu1 %349  ;;  %v395_v41 = vadd.f32 %v391_v24, %v375_v52 }
 0x12a   :  { %v400_v42 = vpop.permute.xlu0 %399 }
 0x12b   :  { %v411_v17 = vmul.f32 %v1903_v51, %v400_v42 }
 0x12d   :  { %v354_v46 = vpop.permute.xlu1 %353  ;;  %v415_v55 = vadd.f32 %v411_v17, %v395_v41 }
 0x12e   :  { %v420_v45 = vpop.permute.xlu0 %419 }
 0x12f   :  { %v431_v58 = vmul.f32 %v1907_v56, %v420_v45  ;;  %v1933_v45 = vld [vmem:[%s2789_s1 + $0x14] ss:$0 sm:$0xff] }
 0x131   :  { %v382_v57 = vpop.permute.xlu1 %381  ;;  %v435_v59 = vadd.f32 %v431_v58, %v415_v55  ;;  %v340_v55 = vmul.f32 %v1883_v18, %v330_v23  ;;  %v326_v23 = vmul.f32 %v1886_v9, %v1877_v8  ;;  %v373_v8 = vmul.f32 %v1895_v39, %v1809_v0 }
 0x132   :  { %v440_v10 = vpop.permute.xlu0 %439 }
 0x133   :  { %v451_v54 = vmul.f32 %v1914_v61, %v440_v10 }
 0x135   :  { %v386_v4 = vpop.permute.xlu1 %385  ;;  %v455_v21 = vadd.f32 %v451_v54, %v435_v59  ;;  %v324_v59 = vmul.f32 %v1886_v9, %v1875_v20 }
 0x136   :  { %v460_v32 = vpop.permute.xlu0 %459 }
 0x137   :  { %v471_v3 = vmul.f32 %v1918_v16, %v460_v32 }
 0x139   :  { %v402_v2 = vpop.permute.xlu1 %401  ;;  %v475_v30 = vadd.f32 %v471_v3, %v455_v21  ;;  %v360_v3 = vmul.f32 %v1889_v25, %v350_v35 }
 0x13a   :  { %v480_v1 = vpop.permute.xlu0 %479 }
 0x13b   :  { %v491_v27 = vmul.f32 %v1922_v62, %v480_v1 }
 0x13d   :  { %v406_v38 = vpop.permute.xlu1 %405  ;;  %v495_v5 = vadd.f32 %v491_v27, %v475_v30  ;;  %v344_v27 = vadd.f32 %v340_v55, %v324_v59  ;;  %v342_v30 = vmul.f32 %v1883_v18, %v334_v26  ;;  %v392_v55 = vmul.f32 %v1898_v44, %v382_v57 }
 0x13e   :  { %v500_v42 = vpop.permute.xlu0 %499 }
 0x13f   :  { %v511_v43 = vmul.f32 %v1927_v29, %v500_v42  ;;  %v346_v35 = vadd.f32 %v342_v30, %v326_v23 }
 0x141   :  { %v515_v48 = vadd.f32 %v511_v43, %v495_v5  ;;  %v422_v52 = vpop.permute.xlu1 %421 }
 0x142   :  { %v316_v24 = vpop.permute.xlu0 %315 }
 0x143   :  { %v523_v10 = vadd.f32 %v1933_v45, %v515_v48  ;;  %v325_v42 = vmul.f32 %v1886_v9, %v316_v24  ;;  %v364_v48 = vadd.f32 %v360_v3, %v344_v27 }
 0x145   :  { %v1936_v17 = vmax.f32 %v523_v10, 0.0  ;;  %v426_v14 = vpop.permute.xlu1 %425  ;;  %v362_v10 = vmul.f32 %v1889_v25, %v354_v46  ;;  %v394_v46 = vmul.f32 %v1898_v44, %v386_v4 }
 0x146   :  { %v332_v41 = vpop.permute.xlu0 %331 }
 0x147   :  { %623 = vrot.lane.b32.xlu0 %v1936_v17, %s1368_s17  ;;  %v341_v21 = vmul.f32 %v1883_v18, %v332_v41  ;;  %v372_v41 = vmul.f32 %v1895_v39, %v1725_v33  ;;  %v366_v24 = vadd.f32 %v362_v10, %v346_v35  ;;  %v432_v33 = vmul.f32 %v1907_v56, %v422_v52 }
 0x149   :  { %v442_v58 = vpop.permute.xlu1 %441  ;;  %v345_v11 = vadd.f32 %v341_v21, %v325_v42  ;;  %v376_v59 = vadd.f32 %v372_v41, %v364_v48 }
 0x14a   :  { %v352_v32 = vpop.permute.xlu0 %351  ;;  %v452_v30 = vmul.f32 %v1914_v61, %v442_v58 }
 0x14b   :  { %635 = vrot.lane.b32.xlu0 %v1936_v17, %s1369_s18  ;;  %v361_v5 = vmul.f32 %v1889_v25, %v352_v32  ;;  %v412_v32 = vmul.f32 %v1903_v51, %v402_v2  ;;  %v396_v9 = vadd.f32 %v392_v55, %v376_v59  ;;  %v374_v25 = vmul.f32 %v1895_v39, %v1737_v36 }
 0x14c   :  { %v414_v2 = vmul.f32 %v1903_v51, %v406_v38  ;;  %v434_v36 = vmul.f32 %v1907_v56, %v426_v14 }
 0x14d   :  { %v446_v54 = vpop.permute.xlu1 %445  ;;  %v365_v18 = vadd.f32 %v361_v5, %v345_v11  ;;  %v378_v21 = vadd.f32 %v374_v25, %v366_v24  ;;  %v416_v27 = vadd.f32 %v412_v32, %v396_v9 }
 0x14e   :  { %v384_v1 = vpop.permute.xlu0 %383  ;;  %v454_v10 = vmul.f32 %v1914_v61, %v446_v54 }
 0x14f   :  { %v377_v3 = vadd.f32 %v373_v8, %v365_v18  ;;  %v393_v11 = vmul.f32 %v1898_v44, %v384_v1  ;;  %v398_v5 = vadd.f32 %v394_v46, %v378_v21  ;;  %v436_v23 = vadd.f32 %v432_v33, %v416_v27 }
 0x151   :  { %v462_v43 = vpop.permute.xlu1 %461  ;;  %v397_v4 = vadd.f32 %v393_v11, %v377_v3  ;;  %v418_v1 = vadd.f32 %v414_v2, %v398_v5  ;;  %v456_v48 = vadd.f32 %v452_v30, %v436_v23 }
 0x152   :  { %v404_v20 = vpop.permute.xlu0 %403  ;;  %v472_v39 = vmul.f32 %v1918_v16, %v462_v43 }
 0x153   :  { %v413_v0 = vmul.f32 %v1903_v51, %v404_v20  ;;  %v438_v20 = vadd.f32 %v434_v36, %v418_v1  ;;  %v535_v36 = vrot.slane %v1936_v17, 7 }
 0x154   :  { %v476_v41 = vadd.f32 %v472_v39, %v456_v48 }
 0x155   :  { %v466_v26 = vpop.permute.xlu1 %465  ;;  %v417_v35 = vadd.f32 %v413_v0, %v397_v4 }
 0x156   :  { %v424_v12 = vpop.permute.xlu0 %423  ;;  %v474_v14 = vmul.f32 %v1918_v16, %v466_v26 }
 0x157   :  { %v433_v52 = vmul.f32 %v1907_v56, %v424_v12  ;;  %v458_v12 = vadd.f32 %v454_v10, %v438_v20 }
 0x159   :  { %v482_v57 = vpop.permute.xlu1 %481  ;;  %v437_v55 = vadd.f32 %v433_v52, %v417_v35  ;;  %v478_v9 = vadd.f32 %v474_v14, %v458_v12  ;;  %v546_v52 = vsel %vm101_vm0, %v1936_v17, %v535_v36 }
 0x15a   :  { %v444_v42 = vpop.permute.xlu0 %443  ;;  %v492_v38 = vmul.f32 %v1922_v62, %v482_v57 }
 0x15b   :  { %v453_v51 = vmul.f32 %v1914_v61, %v444_v42 }
 0x15c   :  { %v496_v56 = vadd.f32 %v492_v38, %v476_v41 }
 0x15d   :  { %v486_v44 = vpop.permute.xlu1 %485  ;;  %v457_v32 = vadd.f32 %v453_v51, %v437_v55 }
 0x15e   :  { %v464_v58 = vpop.permute.xlu0 %463  ;;  %v494_v24 = vmul.f32 %v1922_v62, %v486_v44  ;;  %v547_v44 = vsel %vm1450_vm1, %v1936_v17, %v546_v52 }
 0x15f   :  { %v473_v43 = vmul.f32 %v1918_v16, %v464_v58 }
 0x160   :  { %v498_v33 = vadd.f32 %v494_v24, %v478_v9 }
 0x161   :  { %v502_v18 = vpop.permute.xlu1 %501  ;;  %v477_v25 = vadd.f32 %v473_v43, %v457_v32 }
 0x162   :  { %v484_v59 = vpop.permute.xlu0 %483  ;;  %v512_v54 = vmul.f32 %v1927_v29, %v502_v18 }
 0x163   :  { %v493_v8 = vmul.f32 %v1922_v62, %v484_v59 }
 0x164   :  { %v516_v61 = vadd.f32 %v512_v54, %v496_v56 }
 0x165   :  { %v506_v46 = vpop.permute.xlu1 %505  ;;  %v497_v11 = vadd.f32 %v493_v8, %v477_v25 }
 0x166   :  { %v524_v26 = vadd.f32 %v1933_v45, %v516_v61  ;;  %v504_v3 = vpop.permute.xlu0 %503  ;;  %v514_v16 = vmul.f32 %v1927_v29, %v506_v46 }
 0x167   :  { %v513_v57 = vmul.f32 %v1927_v29, %v504_v3 }
 0x168   :  { %v1981_v21 = vmax.f32 %v524_v26, 0.0  ;;  %v518_v27 = vadd.f32 %v514_v16, %v498_v33 }
 0x169   :  { %v517_v2 = vadd.f32 %v513_v57, %v497_v11  ;;  %v2077_v18 = vpop.permute.xlu1 %1137  ;;  %v16_v11 = vld [vmem:[%s2789_s1 + $0x15] sm:$0xff] }
 0x16a   :  { %v526_v30 = vadd.f32 %v1933_v45, %v518_v27  ;;  %625 = vrot.lane.b32.xlu1 %v1981_v21, %s1368_s17  ;;  %v552_v29 = vrot.slane %v1981_v21, 1  ;;  %v536_v5 = vrot.slane %v1981_v21, 7  ;;  %v2075_v43 = vpop.permute.xlu0 %1135  ;;  %v2097_v57 = vrot.slane %v16_v11, %v1566_v49 }
 0x16b   :  { %v525_v62 = vadd.f32 %v1933_v45, %v517_v2  ;;  %v551_v45 = vrot.slane %v1936_v17, 1  ;;  %v2100_v2 = vrot.slane %v16_v11, %v1569_v50 }
 0x16c   :  { %v1987_v42 = vmax.f32 %v526_v30, 0.0  ;;  %v2011_v39 = vsel %vm101_vm0, %v535_v36, %v536_v5 }
 0x16d   :  { %v1989_v0 = vmax.f32 %v525_v62, 0.0  ;;  %v2005_v23 = vsel %vm118_vm3, %v551_v45, %v552_v29  ;;  %v2081_v56 = vpop.permute.xlu1 %1153  ;;  %v2108_v45 = vrot.slane %v16_v11, %v1580_v53 }
 0x16e   :  { %629 = vrot.lane.b32.xlu1 %v1987_v42, %s1368_s17  ;;  %v556_v4 = vrot.slane %v1987_v42, 1  ;;  %v540_v58 = vrot.slane %v1987_v42, 7  ;;  %v2079_v12 = vpop.permute.xlu0 %1151 }
 0x16f   :  { %627 = vrot.lane.b32.xlu0 %v1989_v0, %s1368_s17  ;;  %v554_v10 = vrot.slane %v1989_v0, 1  ;;  %v538_v38 = vrot.slane %v1989_v0, 7 }
 0x170   :  { %v562_v1 = vsel %vm118_vm3, %v556_v4, %v1987_v42 }
 0x171   :  { %v2031_v48 = vsel %vm1518_vm5, %v1987_v42, %v562_v1  ;;  %v2040_v35 = vsel %vm118_vm3, %v554_v10, %v556_v4  ;;  %v2047_v51 = vsel %vm101_vm0, %v538_v38, %v540_v58  ;;  %v539_v20 = vsel %vm101_vm0, %v536_v5, %v538_v38  ;;  %v2085_v54 = vpop.permute.xlu1 %1157 }
 0x172   :  { %637 = vrot.lane.b32.xlu1 %v1981_v21, %s1369_s18  ;;  %v2057_v41 = vsel %vm1461_vm2, %v1989_v0, %v539_v20  ;;  %v555_v14 = vsel %vm118_vm3, %v552_v29, %v554_v10  ;;  %v2083_v24 = vpop.permute.xlu0 %1155  ;;  %v2116_v1 = vrot.slane %v16_v11, %v1598_v60  ;;  %v603_v10 = vmul.f32 %v2100_v2, %v547_v44 }
 0x173   :  { %639 = vrot.lane.b32.xlu0 %v1989_v0, %s1369_s18  ;;  %v2067_v55 = vsel %vm1500_vm4, %v1981_v21, %v555_v14  ;;  %v604_v20 = vmul.f32 %v2100_v2, %v2011_v39 }
 0x176   :  { %641 = vrot.lane.b32.xlu1 %v1987_v42, %s1369_s18 }
 0x177   :  { %683 = vrot.lane.b32.xlu0 %v2005_v23, %s1368_s17 }
 0x17a   :  { %569 = vrot.lane.b32.xlu1 %v2011_v39, %s1368_s17 }
 0x17b   :  { %695 = vrot.lane.b32.xlu0 %v2005_v23, %s1369_s18 }
 0x17e   :  { %581 = vrot.lane.b32.xlu1 %v2011_v39, %s1369_s18 }
 0x17f   :  { %567 = vrot.lane.b32.xlu0 %v547_v44, %s1368_s17 }
 0x182   :  { %689 = vrot.lane.b32.xlu1 %v2031_v48, %s1368_s17 }
 0x183   :  { %579 = vrot.lane.b32.xlu0 %v547_v44, %s1369_s18 }
 0x186   :  { %701 = vrot.lane.b32.xlu1 %v2031_v48, %s1369_s18 }
 0x187   :  { %687 = vrot.lane.b32.xlu0 %v2040_v35, %s1368_s17 }
 0x18a   :  { %573 = vrot.lane.b32.xlu1 %v2047_v51, %s1368_s17 }
 0x18b   :  { %699 = vrot.lane.b32.xlu0 %v2040_v35, %s1369_s18 }
 0x18e   :  { %585 = vrot.lane.b32.xlu1 %v2047_v51, %s1369_s18 }
 0x18f   :  { %571 = vrot.lane.b32.xlu0 %v2057_v41, %s1368_s17 }
 0x192   :  { %685 = vrot.lane.b32.xlu1 %v2067_v55, %s1368_s17 }
 0x193   :  { %583 = vrot.lane.b32.xlu0 %v2057_v41, %s1369_s18 }
 0x196   :  { %697 = vrot.lane.b32.xlu1 %v2067_v55, %s1369_s18 }
 0x1b9   :  { %v624_v59 = vpop.permute.xlu0 %623 }
 0x1ba   :  { %v631_v58 = vsel %vm83_vm6, %v1936_v17, %v624_v59  ;;  %v2135_v59 = vrot.slane %v16_v11, %v1637_v28 }
 0x1bb   :  { %v651_v31 = vmul.f32 %v2116_v1, %v631_v58  ;;  %v2149_v58 = vrot.slane %v16_v11, %v1674_v63 }
 0x1bd   :  { %v636_v8 = vpop.permute.xlu0 %635 }
 0x1dc   :  { %v626_v32 = vpop.permute.xlu1 %625 }
 0x1e0   :  { %v630_v9 = vpop.permute.xlu1 %629 }
 0x1e1   :  { %v2087_v61 = vpop.permute.xlu0 %627 }
 0x1e4   :  { %v638_v25 = vpop.permute.xlu1 %637 }
 0x1e5   :  { %v2089_v46 = vpop.permute.xlu0 %639 }
 0x1e8   :  { %v2091_v33 = vpop.permute.xlu1 %641 }
 0x1e9   :  { %v684_v26 = vpop.permute.xlu0 %683 }
 0x1ec   :  { %v570_v3 = vpop.permute.xlu1 %569 }
 0x1ed   :  { %v696_v16 = vpop.permute.xlu0 %695  ;;  %v576_v30 = vsel %vm83_vm6, %v2011_v39, %v570_v3 }
 0x1ee   :  { %v596_v4 = vmul.f32 %v2097_v57, %v576_v30  ;;  %v2128_v30 = vrot.slane %v16_v11, %v1619_v15 }
 0x1f0   :  { %v582_v27 = vpop.permute.xlu1 %581 }
 0x1f1   :  { %v568_v62 = vpop.permute.xlu0 %567  ;;  %v588_v36 = vsel %vm84_vm7, %v2011_v39, %v582_v27  ;;  %v632_v39 = vsel %vm83_vm6, %v1981_v21, %v626_v32  ;;  %v691_v32 = vsel %vm83_vm6, %v2005_v23, %v684_v26  ;;  %v723_v26 = vmul.f32 %v2149_v58, %v2005_v23 }
 0x1f2   :  { %v575_v29 = vsel %vm83_vm6, %v547_v44, %v568_v62  ;;  %v616_v14 = vmul.f32 %v2108_v45, %v588_v36 }
 0x1f3   :  { %v595_v5 = vmul.f32 %v2097_v57, %v575_v29  ;;  %v608_v29 = vadd.f32 %v604_v20, %v596_v4  ;;  %v663_v4 = vmul.f32 %v2128_v30, %v1936_v17  ;;  %v652_v20 = vmul.f32 %v2116_v1, %v632_v39  ;;  %v2168_v39 = vld [vmem:[%s2789_s1 + $0x1d] ss:$0 sm:$0xff] }
 0x1f4   :  { %v690_v52 = vpop.permute.xlu1 %689 }
 0x1f5   :  { %v580_v38 = vpop.permute.xlu0 %579  ;;  %v607_v27 = vadd.f32 %v603_v10, %v595_v5  ;;  %v620_v5 = vadd.f32 %v616_v14, %v608_v29  ;;  %v2144_v10 = vrot.slane %v16_v11, %v1647_v34 }
 0x1f6   :  { %v587_v3 = vsel %vm84_vm7, %v547_v44, %v580_v38  ;;  %v643_v44 = vsel %vm84_vm7, %v1936_v17, %v636_v8 }
 0x1f7   :  { %v615_v62 = vmul.f32 %v2108_v45, %v587_v3  ;;  %v675_v8 = vmul.f32 %v2135_v59, %v643_v44  ;;  %v711_v11 = vmul.f32 %v2144_v10, %v691_v32 }
 0x1f8   :  { %v2131_v37 = vpop.permute.xlu1 %701 }
 0x1f9   :  { %v619_v36 = vadd.f32 %v615_v62, %v607_v27  ;;  %v656_v62 = vadd.f32 %v652_v20, %v620_v5  ;;  %v644_v20 = vsel %vm84_vm7, %v1981_v21, %v638_v25 }
 0x1fb   :  { %v655_v38 = vadd.f32 %v651_v31, %v619_v36  ;;  %v606_v31 = vmul.f32 %v2100_v2, %v2047_v51  ;;  %v703_v36 = vsel %vm84_vm7, %v2005_v23, %v696_v16 }
 0x1fc   :  { %v574_v3 = vpop.permute.xlu1 %573 }
 0x1fd   :  { %v667_v14 = vadd.f32 %v663_v4, %v655_v38  ;;  %v578_v27 = vsel %vm83_vm6, %v2047_v51, %v574_v3  ;;  %v664_v4 = vmul.f32 %v2128_v30, %v1981_v21  ;;  %v634_v38 = vsel %vm83_vm6, %v1987_v42, %v630_v9 }
 0x1fe   :  { %v598_v17 = vmul.f32 %v2097_v57, %v578_v27  ;;  %v654_v27 = vmul.f32 %v2116_v1, %v634_v38  ;;  %v646_v21 = vsel %vm84_vm7, %v1987_v42, %v2091_v33  ;;  %v688_v38 = vpop.permute.xlu0 %687 }
 0x1ff   :  { %v679_v29 = vadd.f32 %v675_v8, %v667_v14  ;;  %v668_v16 = vadd.f32 %v664_v4, %v656_v62  ;;  %v735_v8 = vmul.f32 %v2168_v39, %v703_v36  ;;  %v666_v62 = vmul.f32 %v2128_v30, %v1987_v42 }
 0x200   :  { %v610_v44 = vadd.f32 %v606_v31, %v598_v17  ;;  %v586_v5 = vpop.permute.xlu1 %585  ;;  %v676_v31 = vmul.f32 %v2135_v59, %v644_v20  ;;  %v694_v36 = vsel %vm83_vm6, %v2031_v48, %v690_v52  ;;  %v678_v33 = vmul.f32 %v2135_v59, %v646_v21 }
 0x201   :  { %v715_v32 = vadd.f32 %v711_v11, %v679_v29  ;;  %v590_v3 = vsel %vm84_vm7, %v2047_v51, %v586_v5  ;;  %v724_v4 = vmul.f32 %v2149_v58, %v2067_v55 }
 0x202   :  { %v618_v23 = vmul.f32 %v2108_v45, %v590_v3  ;;  %v680_v29 = vadd.f32 %v676_v31, %v668_v16  ;;  %v726_v16 = vmul.f32 %v2149_v58, %v2031_v48 }
 0x203   :  { %v727_v14 = vadd.f32 %v723_v26, %v715_v32  ;;  %v714_v32 = vmul.f32 %v2144_v10, %v694_v36 }
 0x204   :  { %v622_v9 = vadd.f32 %v618_v23, %v610_v44  ;;  %v686_v17 = vpop.permute.xlu1 %685 }
 0x205   :  { %v2192_v25 = vadd.f32 %v735_v8, %v727_v14  ;;  %v692_v51 = vsel %vm83_vm6, %v2067_v55, %v686_v17 }
 0x206   :  { %v658_v11 = vadd.f32 %v654_v27, %v622_v9  ;;  %v712_v26 = vmul.f32 %v2144_v10, %v692_v51 }
 0x207   :  { %743 = vrot.lane.b32.xlu0 %v2192_v25, %s1380_s15 }
 0x208   :  { %v670_v44 = vadd.f32 %v666_v62, %v658_v11  ;;  %v716_v5 = vadd.f32 %v712_v26, %v680_v29  ;;  %v698_v42 = vpop.permute.xlu1 %697  ;;  %v605_v62 = vmul.f32 %v2100_v2, %v2057_v41 }
 0x209   :  { %v704_v20 = vsel %vm84_vm7, %v2067_v55, %v698_v42  ;;  %v700_v55 = vpop.permute.xlu0 %699 }
 0x20a   :  { %v682_v52 = vadd.f32 %v678_v33, %v670_v44  ;;  %v728_v3 = vadd.f32 %v724_v4, %v716_v5  ;;  %v736_v23 = vmul.f32 %v2168_v39, %v704_v20  ;;  %v2385_v20 = vld [vmem:[%s2788_s0 + $0x8] sm:$0xff] }
 0x20b   :  { %759 = vrot.lane.b32.xlu0 %v2192_v25, %s1381_s16 }
 0x20c   :  { %v718_v8 = vadd.f32 %v714_v32, %v682_v52  ;;  %v2217_v14 = vadd.f32 %v736_v23, %v728_v3  ;;  %v2394_v3 = vld [vmem:[%s2788_s0 + $0x18] sm:$0xff] }
 0x20d   :  { %v572_v31 = vpop.permute.xlu0 %571 }
 0x20e   :  { %v730_v27 = vadd.f32 %v726_v16, %v718_v8  ;;  %745 = vrot.lane.b32.xlu1 %v2217_v14, %s1380_s15  ;;  %v577_v17 = vsel %vm83_vm6, %v2057_v41, %v572_v31 }
 0x20f   :  { %779 = vrot.lane.b32.xlu0 %v2192_v25, %s1382_s21  ;;  %v597_v51 = vmul.f32 %v2097_v57, %v577_v17  ;;  %v633_v57 = vsel %vm83_vm6, %v1989_v0, %v2087_v61  ;;  %v645_v61 = vsel %vm84_vm7, %v1989_v0, %v2089_v46  ;;  %v725_v46 = vmul.f32 %v2149_v58, %v2040_v35 }
 0x210   :  { %v706_v58 = vsel %vm84_vm7, %v2031_v48, %v2131_v37  ;;  %v2369_v37 = vld [vmem:[%s2788_s0] sm:$0xff] }
 0x211   :  { %v584_v9 = vpop.permute.xlu0 %583  ;;  %v609_v29 = vadd.f32 %v605_v62, %v597_v51 }
 0x212   :  { %761 = vrot.lane.b32.xlu1 %v2217_v14, %s1381_s16  ;;  %v589_v21 = vsel %vm84_vm7, %v2057_v41, %v584_v9  ;;  %v653_v41 = vmul.f32 %v2116_v1, %v633_v57  ;;  %v677_v1 = vmul.f32 %v2135_v59, %v645_v61  ;;  %v705_v59 = vsel %vm84_vm7, %v2040_v35, %v700_v55 }
 0x213   :  { %799 = vrot.lane.b32.xlu0 %v2192_v25, %s1383_s22  ;;  %v617_v11 = vmul.f32 %v2108_v45, %v589_v21  ;;  %v665_v45 = vmul.f32 %v2128_v30, %v1989_v0  ;;  %v693_v30 = vsel %vm83_vm6, %v2040_v35, %v688_v38  ;;  %v738_v35 = vmul.f32 %v2168_v39, %v706_v58 }
 0x214   :  { %v713_v44 = vmul.f32 %v2144_v10, %v693_v30  ;;  %v737_v10 = vmul.f32 %v2168_v39, %v705_v59  ;;  %v2378_v39 = vld [vmem:[%s2788_s0 + $0x10] sm:$0xff] }
 0x215   :  { %v621_v26 = vadd.f32 %v617_v11, %v609_v29  ;;  %v2314_v42 = vadd.f32 %v738_v35, %v730_v27  ;;  %v18_v27 = vld [vmem:[%s2789_s1 + $0x1e] sm:$0xff] }
 0x216   :  { %781 = vrot.lane.b32.xlu1 %v2217_v14, %s1382_s21  ;;  %v2408_v31 = vrot.slane %v18_v27, %v1569_v50  ;;  %v2415_v9 = vrot.slane %v18_v27, %v1566_v49  ;;  %v2418_v17 = vrot.slane %v18_v27, %v1580_v53  ;;  %v2422_v11 = vrot.slane %v18_v27, %v1598_v60 }
 0x217   :  { %819 = vrot.lane.b32.xlu0 %v2192_v25, %s1370_s19  ;;  %v657_v2 = vadd.f32 %v653_v41, %v621_v26  ;;  %v2431_v26 = vrot.slane %v18_v27, %v1619_v15 }
 0x219   :  { %v669_v36 = vadd.f32 %v665_v45, %v657_v2 }
 0x21a   :  { %801 = vrot.lane.b32.xlu1 %v2217_v14, %s1383_s22 }
 0x21b   :  { %839 = vrot.lane.b32.xlu0 %v2192_v25, %s1371_s20  ;;  %v681_v33 = vadd.f32 %v677_v1, %v669_v36  ;;  %v2435_v36 = vrot.slane %v18_v27, %v1637_v28 }
 0x21d   :  { %v717_v0 = vadd.f32 %v713_v44, %v681_v33  ;;  %v2443_v33 = vrot.slane %v18_v27, %v1647_v34 }
 0x21e   :  { %821 = vrot.lane.b32.xlu1 %v2217_v14, %s1370_s19 }
 0x21f   :  { %859 = vrot.lane.b32.xlu0 %v2192_v25, %s1372_s25  ;;  %v729_v5 = vadd.f32 %v725_v46, %v717_v0 }
 0x221   :  { %v2299_v4 = vadd.f32 %v737_v10, %v729_v5 }
 0x222   :  { %841 = vrot.lane.b32.xlu1 %v2217_v14, %s1371_s20 }
 0x223   :  { %891 = vrot.lane.b32.xlu0 %v2192_v25, %s1373_s26 }
 0x226   :  { %861 = vrot.lane.b32.xlu1 %v2217_v14, %s1372_s25 }
 0x227   :  { %911 = vrot.lane.b32.xlu0 %v2192_v25, %s1374_s27 }
 0x22a   :  { %893 = vrot.lane.b32.xlu1 %v2217_v14, %s1373_s26 }
 0x22b   :  { %931 = vrot.lane.b32.xlu0 %v2192_v25, %s1375_s28 }
 0x22e   :  { %913 = vrot.lane.b32.xlu1 %v2217_v14, %s1374_s27 }
 0x22f   :  { %951 = vrot.lane.b32.xlu0 %v2192_v25, %s1376_s29 }
 0x232   :  { %933 = vrot.lane.b32.xlu1 %v2217_v14, %s1375_s28 }
 0x233   :  { %971 = vrot.lane.b32.xlu0 %v2192_v25, %s1377_s30 }
 0x236   :  { %953 = vrot.lane.b32.xlu1 %v2217_v14, %s1376_s29 }
 0x237   :  { %991 = vrot.lane.b32.xlu0 %v2192_v25, %s1378_s3 }
 0x23a   :  { %973 = vrot.lane.b32.xlu1 %v2217_v14, %s1377_s30 }
 0x23b   :  { %1011 = vrot.lane.b32.xlu0 %v2192_v25, %s1379_s4 }
 0x23e   :  { %993 = vrot.lane.b32.xlu1 %v2217_v14, %s1378_s3 }
 0x23f   :  { %747 = vrot.lane.b32.xlu0 %v2299_v4, %s1380_s15 }
 0x242   :  { %1013 = vrot.lane.b32.xlu1 %v2217_v14, %s1379_s4 }
 0x243   :  { %763 = vrot.lane.b32.xlu0 %v2299_v4, %s1381_s16 }
 0x246   :  { %749 = vrot.lane.b32.xlu1 %v2314_v42, %s1380_s15 }
 0x247   :  { %783 = vrot.lane.b32.xlu0 %v2299_v4, %s1382_s21 }
 0x24a   :  { %765 = vrot.lane.b32.xlu1 %v2314_v42, %s1381_s16 }
 0x24b   :  { %803 = vrot.lane.b32.xlu0 %v2299_v4, %s1383_s22 }
 0x24e   :  { %785 = vrot.lane.b32.xlu1 %v2314_v42, %s1382_s21 }
 0x24f   :  { %823 = vrot.lane.b32.xlu0 %v2299_v4, %s1370_s19 }
 0x252   :  { %805 = vrot.lane.b32.xlu1 %v2314_v42, %s1383_s22 }
 0x253   :  { %843 = vrot.lane.b32.xlu0 %v2299_v4, %s1371_s20 }
 0x256   :  { %825 = vrot.lane.b32.xlu1 %v2314_v42, %s1370_s19 }
 0x257   :  { %863 = vrot.lane.b32.xlu0 %v2299_v4, %s1372_s25 }
 0x25a   :  { %845 = vrot.lane.b32.xlu1 %v2314_v42, %s1371_s20 }
 0x25b   :  { %895 = vrot.lane.b32.xlu0 %v2299_v4, %s1373_s26 }
 0x25e   :  { %865 = vrot.lane.b32.xlu1 %v2314_v42, %s1372_s25 }
 0x25f   :  { %915 = vrot.lane.b32.xlu0 %v2299_v4, %s1374_s27 }
 0x262   :  { %897 = vrot.lane.b32.xlu1 %v2314_v42, %s1373_s26 }
 0x263   :  { %935 = vrot.lane.b32.xlu0 %v2299_v4, %s1375_s28 }
 0x266   :  { %917 = vrot.lane.b32.xlu1 %v2314_v42, %s1374_s27 }
 0x267   :  { %955 = vrot.lane.b32.xlu0 %v2299_v4, %s1376_s29 }
 0x26a   :  { %937 = vrot.lane.b32.xlu1 %v2314_v42, %s1375_s28 }
 0x26b   :  { %975 = vrot.lane.b32.xlu0 %v2299_v4, %s1377_s30 }
 0x26e   :  { %957 = vrot.lane.b32.xlu1 %v2314_v42, %s1376_s29 }
 0x26f   :  { %995 = vrot.lane.b32.xlu0 %v2299_v4, %s1378_s3 }
 0x272   :  { %977 = vrot.lane.b32.xlu1 %v2314_v42, %s1377_s30 }
 0x273   :  { %1015 = vrot.lane.b32.xlu0 %v2299_v4, %s1379_s4 }
 0x276   :  { %997 = vrot.lane.b32.xlu1 %v2314_v42, %s1378_s3 }
 0x277   :  { %1183 = vrot.lane.b32.xlu0 %v2369_v37, %s1373_s26 }
 0x279   :  { %v744_v48 = vpop.permute.xlu0 %743 }
 0x27a   :  { %1017 = vrot.lane.b32.xlu1 %v2314_v42, %s1379_s4  ;;  %v755_v29 = vmul.f32 %v2415_v9, %v744_v48 }
 0x27b   :  { %1187 = vrot.lane.b32.xlu0 %v2378_v39, %s1373_s26 }
 0x27d   :  { %v760_v38 = vpop.permute.xlu0 %759 }
 0x27e   :  { %1185 = vrot.lane.b32.xlu1 %v2385_v20, %s1373_s26  ;;  %v771_v62 = vmul.f32 %v2408_v31, %v760_v38 }
 0x27f   :  { %1203 = vrot.lane.b32.xlu0 %v2369_v37, %s1374_s27 }
 0x280   :  { %v746_v32 = vpop.permute.xlu1 %745  ;;  %v775_v45 = vadd.f32 %v771_v62, %v755_v29 }
 0x281   :  { %v780_v52 = vpop.permute.xlu0 %779  ;;  %v756_v10 = vmul.f32 %v2415_v9, %v746_v32  ;;  %v2459_v32 = vrot.slane %v18_v27, %v1674_v63 }
 0x282   :  { %1189 = vrot.lane.b32.xlu1 %v2394_v3, %s1373_s26  ;;  %v791_v57 = vmul.f32 %v2418_v17, %v780_v52 }
 0x283   :  { %1207 = vrot.lane.b32.xlu0 %v2378_v39, %s1374_s27  ;;  %v883_v27 = vmul.f32 %v2459_v32, %v2192_v25 }
 0x284   :  { %v762_v23 = vpop.permute.xlu1 %761  ;;  %v795_v1 = vadd.f32 %v791_v57, %v775_v45 }
 0x285   :  { %v800_v16 = vpop.permute.xlu0 %799  ;;  %v772_v0 = vmul.f32 %v2408_v31, %v762_v23 }
 0x286   :  { %1205 = vrot.lane.b32.xlu1 %v2385_v20, %s1374_s27  ;;  %v811_v61 = vmul.f32 %v2422_v11, %v800_v16  ;;  %v19_v16 = vld [vmem:[%s2789_s1 + $0x26] sm:$0x7f] }
 0x287   :  { %1223 = vrot.lane.b32.xlu0 %v2369_v37, %s1375_s28  ;;  %v776_v52 = vadd.f32 %v772_v0, %v756_v10 }
 0x288   :  { %v782_v8 = vpop.permute.xlu1 %781  ;;  %v815_v59 = vadd.f32 %v811_v61, %v795_v1  ;;  %v2473_v1 = vrot.slane %v19_v16, %v1569_v50 }
 0x289   :  { %v820_v55 = vpop.permute.xlu0 %819  ;;  %v792_v58 = vmul.f32 %v2418_v17, %v782_v8 }
 0x28a   :  { %1209 = vrot.lane.b32.xlu1 %v2394_v3, %s1374_s27  ;;  %v831_v30 = vmul.f32 %v2431_v26, %v820_v55 }
 0x28b   :  { %1227 = vrot.lane.b32.xlu0 %v2378_v39, %s1375_s28  ;;  %v796_v8 = vadd.f32 %v792_v58, %v776_v52  ;;  %v2494_v52 = vrot.slane %v19_v16, %v1619_v15 }
 0x28c   :  { %v802_v21 = vpop.permute.xlu1 %801  ;;  %v835_v35 = vadd.f32 %v831_v30, %v815_v59 }
 0x28d   :  { %v840_v51 = vpop.permute.xlu0 %839  ;;  %v812_v23 = vmul.f32 %v2422_v11, %v802_v21  ;;  %v2467_v21 = vrot.slane %v19_v16, %v1566_v49 }
 0x28e   :  { %1225 = vrot.lane.b32.xlu1 %v2385_v20, %s1375_s28  ;;  %v851_v5 = vmul.f32 %v2435_v36, %v840_v51 }
 0x28f   :  { %1243 = vrot.lane.b32.xlu0 %v2369_v37, %s1376_s29 }
 0x290   :  { %v822_v41 = vpop.permute.xlu1 %821  ;;  %v855_v51 = vadd.f32 %v851_v5, %v835_v35  ;;  %v2486_v35 = vrot.slane %v19_v16, %v1598_v60 }
 0x291   :  { %v860_v2 = vpop.permute.xlu0 %859  ;;  %v832_v62 = vmul.f32 %v2431_v26, %v822_v41 }
 0x292   :  { %1229 = vrot.lane.b32.xlu1 %v2394_v3, %s1375_s28  ;;  %v871_v48 = vmul.f32 %v2443_v33, %v860_v2  ;;  %v816_v2 = vadd.f32 %v812_v23, %v796_v8 }
 0x293   :  { %1247 = vrot.lane.b32.xlu0 %v2378_v39, %s1376_s29 }
 0x294   :  { %v842_v44 = vpop.permute.xlu1 %841  ;;  %v875_v29 = vadd.f32 %v871_v48, %v855_v51  ;;  %v836_v41 = vadd.f32 %v832_v62, %v816_v2 }
 0x295   :  { %v892_v46 = vpop.permute.xlu0 %891  ;;  %v852_v45 = vmul.f32 %v2435_v36, %v842_v44  ;;  %v2482_v44 = vrot.slane %v19_v16, %v1580_v53 }
 0x296   :  { %1245 = vrot.lane.b32.xlu1 %v2385_v20, %s1376_s29  ;;  %v887_v0 = vadd.f32 %v883_v27, %v875_v29  ;;  %v903_v59 = vmul.f32 %v2467_v21, %v892_v46  ;;  %v2502_v29 = vrot.slane %v19_v16, %v1637_v28 }
 0x297   :  { %1263 = vrot.lane.b32.xlu0 %v2369_v37, %s1377_s30  ;;  %v856_v25 = vadd.f32 %v852_v45, %v836_v41 }
 0x298   :  { %v862_v38 = vpop.permute.xlu1 %861 }
 0x299   :  { %v912_v55 = vpop.permute.xlu0 %911  ;;  %v872_v30 = vmul.f32 %v2443_v33, %v862_v38  ;;  %v907_v38 = vadd.f32 %v903_v59, %v887_v0 }
 0x29a   :  { %1249 = vrot.lane.b32.xlu1 %v2394_v3, %s1376_s29  ;;  %v923_v58 = vmul.f32 %v2473_v1, %v912_v55  ;;  %v884_v55 = vmul.f32 %v2459_v32, %v2217_v14 }
 0x29b   :  { %1267 = vrot.lane.b32.xlu0 %v2378_v39, %s1377_s30  ;;  %v876_v48 = vadd.f32 %v872_v30, %v856_v25  ;;  %v2511_v25 = vrot.slane %v19_v16, %v1647_v34 }
 0x29c   :  { %v894_v57 = vpop.permute.xlu1 %893  ;;  %v927_v8 = vadd.f32 %v923_v58, %v907_v38 }
 0x29d   :  { %v932_v61 = vpop.permute.xlu0 %931  ;;  %v888_v2 = vadd.f32 %v884_v55, %v876_v48  ;;  %v904_v45 = vmul.f32 %v2467_v21, %v894_v57 }
 0x29e   :  { %1265 = vrot.lane.b32.xlu1 %v2385_v20, %s1377_s30  ;;  %v943_v46 = vmul.f32 %v2482_v44, %v932_v61 }
 0x29f   :  { %1283 = vrot.lane.b32.xlu0 %v2369_v37, %s1378_s3 }
 0x2a0   :  { %v914_v5 = vpop.permute.xlu1 %913  ;;  %v947_v61 = vadd.f32 %v943_v46, %v927_v8 }
 0x2a1   :  { %v952_v10 = vpop.permute.xlu0 %951  ;;  %v924_v30 = vmul.f32 %v2473_v1, %v914_v5 }
 0x2a2   :  { %1269 = vrot.lane.b32.xlu1 %v2394_v3, %s1377_s30  ;;  %v963_v62 = vmul.f32 %v2486_v35, %v952_v10  ;;  %v908_v10 = vadd.f32 %v904_v45, %v888_v2 }
 0x2a3   :  { %1287 = vrot.lane.b32.xlu0 %v2378_v39, %s1378_s3 }
 0x2a4   :  { %v934_v23 = vpop.permute.xlu1 %933  ;;  %v967_v0 = vadd.f32 %v963_v62, %v947_v61  ;;  %v928_v38 = vadd.f32 %v924_v30, %v908_v10  ;;  %v2519_v62 = vld [vmem:[%s2789_s1 + $0x2d] ss:$0 sm:$0xff] }
 0x2a5   :  { %v972_v51 = vpop.permute.xlu0 %971  ;;  %v944_v58 = vmul.f32 %v2482_v44, %v934_v23 }
 0x2a6   :  { %1285 = vrot.lane.b32.xlu1 %v2385_v20, %s1378_s3  ;;  %v983_v27 = vmul.f32 %v2494_v52, %v972_v51 }
 0x2a7   :  { %v948_v8 = vadd.f32 %v944_v58, %v928_v38 }
 0x2a8   :  { %v954_v41 = vpop.permute.xlu1 %953  ;;  %v987_v57 = vadd.f32 %v983_v27, %v967_v0 }
 0x2a9   :  { %v992_v14 = vpop.permute.xlu0 %991  ;;  %v964_v46 = vmul.f32 %v2486_v35, %v954_v41 }
 0x2aa   :  { %v1003_v59 = vmul.f32 %v2502_v29, %v992_v14  ;;  %1289 = vrot.lane.b32.xlu1 %v2394_v3, %s1378_s3 }
 0x2ab   :  { %v968_v23 = vadd.f32 %v964_v46, %v948_v8 }
 0x2ac   :  { %v974_v48 = vpop.permute.xlu1 %973  ;;  %v1007_v5 = vadd.f32 %v1003_v59, %v987_v57 }
 0x2ad   :  { %v1012_v55 = vpop.permute.xlu0 %1011  ;;  %v984_v16 = vmul.f32 %v2494_v52, %v974_v48 }
 0x2ae   :  { %v1023_v51 = vmul.f32 %v2511_v25, %v1012_v55 }
 0x2af   :  { %v988_v30 = vadd.f32 %v984_v16, %v968_v23 }
 0x2b0   :  { %v1027_v2 = vadd.f32 %v1023_v51, %v1007_v5  ;;  %v994_v45 = vpop.permute.xlu1 %993 }
 0x2b1   :  { %v748_v61 = vpop.permute.xlu0 %747  ;;  %v1004_v27 = vmul.f32 %v2502_v29, %v994_v45 }
 0x2b2   :  { %v2524_v41 = vadd.f32 %v2519_v62, %v1027_v2 }
 0x2b3   :  { %v1008_v0 = vadd.f32 %v1004_v27, %v988_v30 }
 0x2b4   :  { %1039 = vrot.lane.b32.xlu0 %v2524_v41, %s1368_s17  ;;  %v1014_v14 = vpop.permute.xlu1 %1013 }
 0x2b5   :  { %v764_v59 = vpop.permute.xlu0 %763  ;;  %v1024_v10 = vmul.f32 %v2511_v25, %v1014_v14 }
 0x2b7   :  { %v1028_v58 = vadd.f32 %v1024_v10, %v1008_v0  ;;  %v773_v0 = vmul.f32 %v2408_v31, %v764_v59 }
 0x2b8   :  { %1051 = vrot.lane.b32.xlu0 %v2524_v41, %s1369_s18  ;;  %v750_v57 = vpop.permute.xlu1 %749 }
 0x2b9   :  { %v2532_v48 = vadd.f32 %v2519_v62, %v1028_v58  ;;  %v784_v38 = vpop.permute.xlu0 %783  ;;  %v758_v55 = vmul.f32 %v2415_v9, %v750_v57  ;;  %v757_v58 = vmul.f32 %v2415_v9, %v748_v61 }
 0x2ba   :  { %v793_v57 = vmul.f32 %v2418_v17, %v784_v38 }
 0x2bb   :  { %2813 = vst [vmem:[#allocation8_spill] sm:$0xff] %v2532_v48  ;;  %1041 = vrot.lane.b32.xlu1 %v2532_v48, %s1368_s17  ;;  %v777_v22 = vadd.f32 %v773_v0, %v757_v58 }
 0x2bc   :  { %v766_v46 = vpop.permute.xlu1 %765 }
 0x2bd   :  { %v804_v5 = vpop.permute.xlu0 %803  ;;  %v774_v51 = vmul.f32 %v2408_v31, %v766_v46 }
 0x2be   :  { %v813_v19 = vmul.f32 %v2422_v11, %v804_v5 }
 0x2bf   :  { %v778_v8 = vadd.f32 %v774_v51, %v758_v55  ;;  %1053 = vrot.lane.b32.xlu1 %v2532_v48, %s1369_s18 }
 0x2c0   :  { %v786_v16 = vpop.permute.xlu1 %785 }
 0x2c1   :  { %v824_v2 = vpop.permute.xlu0 %823  ;;  %v794_v45 = vmul.f32 %v2418_v17, %v786_v16 }
 0x2c3   :  { %v798_v23 = vadd.f32 %v794_v45, %v778_v8  ;;  %v797_v8 = vadd.f32 %v793_v57, %v777_v22  ;;  %v833_v45 = vmul.f32 %v2431_v26, %v824_v2  ;;  %v886_v22 = vmul.f32 %v2459_v32, %v2314_v42 }
 0x2c4   :  { %v806_v27 = vpop.permute.xlu1 %805 }
 0x2c5   :  { %v844_v30 = vpop.permute.xlu0 %843  ;;  %v814_v14 = vmul.f32 %v2422_v11, %v806_v27  ;;  %v817_v59 = vadd.f32 %v813_v19, %v797_v8 }
 0x2c6   :  { %v853_v9 = vmul.f32 %v2435_v36, %v844_v30 }
 0x2c7   :  { %v818_v10 = vadd.f32 %v814_v14, %v798_v23  ;;  %v837_v17 = vadd.f32 %v833_v45, %v817_v59 }
 0x2c8   :  { %v826_v46 = vpop.permute.xlu1 %825 }
 0x2c9   :  { %v864_v55 = vpop.permute.xlu0 %863  ;;  %v834_v51 = vmul.f32 %v2431_v26, %v826_v46  ;;  %v857_v11 = vadd.f32 %v853_v9, %v837_v17 }
 0x2ca   :  { %v873_v38 = vmul.f32 %v2443_v33, %v864_v55 }
 0x2cb   :  { %v838_v16 = vadd.f32 %v834_v51, %v818_v10 }
 0x2cc   :  { %v846_v48 = vpop.permute.xlu1 %845  ;;  %v877_v26 = vadd.f32 %v873_v38, %v857_v11 }
 0x2cd   :  { %v896_v27 = vpop.permute.xlu0 %895  ;;  %v854_v31 = vmul.f32 %v2435_v36, %v846_v48  ;;  %v885_v36 = vmul.f32 %v2459_v32, %v2299_v4 }
 0x2ce   :  { %v905_v57 = vmul.f32 %v2467_v21, %v896_v27 }
 0x2cf   :  { %v858_v61 = vadd.f32 %v854_v31, %v838_v16  ;;  %v889_v58 = vadd.f32 %v885_v36, %v877_v26 }
 0x2d0   :  { %v866_v23 = vpop.permute.xlu1 %865 }
 0x2d1   :  { %v916_v14 = vpop.permute.xlu0 %915  ;;  %v874_v0 = vmul.f32 %v2443_v33, %v866_v23  ;;  %v909_v16 = vadd.f32 %v905_v57, %v889_v58 }
 0x2d2   :  { %v925_v51 = vmul.f32 %v2473_v1, %v916_v14 }
 0x2d3   :  { %v878_v5 = vadd.f32 %v874_v0, %v858_v61 }
 0x2d4   :  { %v898_v2 = vpop.permute.xlu1 %897  ;;  %v929_v9 = vadd.f32 %v925_v51, %v909_v16 }
 0x2d5   :  { %v936_v10 = vpop.permute.xlu0 %935  ;;  %v890_v48 = vadd.f32 %v886_v22, %v878_v5  ;;  %v906_v19 = vmul.f32 %v2467_v21, %v898_v2 }
 0x2d6   :  { %v945_v8 = vmul.f32 %v2482_v44, %v936_v10 }
 0x2d7   :  { %v910_v30 = vadd.f32 %v906_v19, %v890_v48 }
 0x2d8   :  { %v918_v46 = vpop.permute.xlu1 %917  ;;  %v949_v61 = vadd.f32 %v945_v8, %v929_v9 }
 0x2d9   :  { %v956_v33 = vpop.permute.xlu0 %955  ;;  %v926_v55 = vmul.f32 %v2473_v1, %v918_v46 }
 0x2da   :  { %v965_v4 = vmul.f32 %v2486_v35, %v956_v33 }
 0x2db   :  { %v930_v42 = vadd.f32 %v926_v55, %v910_v30 }
 0x2dc   :  { %v938_v45 = vpop.permute.xlu1 %937  ;;  %v969_v1 = vadd.f32 %v965_v4, %v949_v61 }
 0x2dd   :  { %v976_v31 = vpop.permute.xlu0 %975  ;;  %v946_v59 = vmul.f32 %v2482_v44, %v938_v45 }
 0x2de   :  { %v985_v21 = vmul.f32 %v2494_v52, %v976_v31 }
 0x2df   :  { %v950_v32 = vadd.f32 %v946_v59, %v930_v42 }
 0x2e0   :  { %v958_v27 = vpop.permute.xlu1 %957  ;;  %v989_v0 = vadd.f32 %v985_v21, %v969_v1  ;;  %v21_v1 = vld [vmem:[%s2789_s1 + $0x2e] sm:$0xff] }
 0x2e1   :  { %v996_v17 = vpop.permute.xlu0 %995  ;;  %v966_v38 = vmul.f32 %v2486_v35, %v958_v27 }
 0x2e2   :  { %v1005_v23 = vmul.f32 %v2502_v29, %v996_v17 }
 0x2e3   :  { %v970_v14 = vadd.f32 %v966_v38, %v950_v32 }
 0x2e4   :  { %v978_v11 = vpop.permute.xlu1 %977  ;;  %v1009_v22 = vadd.f32 %v1005_v23, %v989_v0  ;;  %v1126_v23 = vrot.slane %v21_v1, %v1566_v49 }
 0x2e5   :  { %v1016_v5 = vpop.permute.xlu0 %1015  ;;  %v986_v44 = vmul.f32 %v2494_v52, %v978_v11 }
 0x2e6   :  { %v1025_v26 = vmul.f32 %v2511_v25, %v1016_v5  ;;  %v1162_v5 = vrot.slane %v21_v1, %v1580_v53 }
 0x2e7   :  { %v990_v2 = vadd.f32 %v986_v44, %v970_v14  ;;  %v1142_v14 = vrot.slane %v21_v1, %v1569_v50  ;;  %v1128_v44 = vmul.f32 %v1126_v23, %v1865_v7  ;;  %v2820_v7 = vld [vmem:[#allocation7_spill] sm:$0xff] }
 0x2e8   :  { %v1029_v10 = vadd.f32 %v1025_v26, %v1009_v22  ;;  %v998_v48 = vpop.permute.xlu1 %997  ;;  %v1127_v26 = vmul.f32 %v1126_v23, %v1863_v40 }
 0x2e9   :  { %v1006_v19 = vmul.f32 %v2502_v29, %v998_v48  ;;  %v1184_v29 = vpop.permute.xlu0 %1183  ;;  %v1144_v22 = vmul.f32 %v1142_v14, %v1873_v6  ;;  %v1174_v48 = vrot.slane %v21_v1, %v1598_v60  ;;  %v2821_v6 = vld [vmem:[#allocation6_spill] sm:$0xff] }
 0x2ea   :  { %v2570_v36 = vadd.f32 %v2519_v62, %v1029_v10  ;;  %v1146_v10 = vmul.f32 %v1142_v14, %v2077_v18  ;;  %v1166_v18 = vmul.f32 %v1162_v5, %v2085_v54  ;;  %v1214_v54 = vrot.slane %v21_v1, %v1637_v28 }
 0x2eb   :  { %v1010_v35 = vadd.f32 %v1006_v19, %v990_v2  ;;  %v1143_v2 = vmul.f32 %v1142_v14, %v1871_v13  ;;  %v1148_v40 = vadd.f32 %v1144_v22, %v1128_v44  ;;  %v1165_v13 = vmul.f32 %v1162_v5, %v2083_v24 }
 0x2ec   :  { %1043 = vrot.lane.b32.xlu0 %v2570_v36, %s1368_s17  ;;  %v1018_v30 = vpop.permute.xlu1 %1017  ;;  %v1234_v28 = vrot.slane %v21_v1, %v1647_v34 }
 0x2ed   :  { %v1026_v58 = vmul.f32 %v2511_v25, %v1018_v30  ;;  %v1163_v30 = vmul.f32 %v1162_v5, %v2079_v12 }
 0x2ef   :  { %v1030_v57 = vadd.f32 %v1026_v58, %v1010_v35  ;;  %v1145_v35 = vmul.f32 %v1142_v14, %v2075_v43  ;;  %v1164_v58 = vmul.f32 %v1162_v5, %v2081_v56  ;;  %v1176_v43 = vmul.f32 %v2385_v20, %v1174_v48 }
 0x2f0   :  { %1055 = vrot.lane.b32.xlu0 %v2570_v36, %s1369_s18  ;;  %v2592_v25 = vpop.permute.xlu1 %1185 }
 0x2f1   :  { %v2578_v52 = vadd.f32 %v2519_v62, %v1030_v57  ;;  %v2594_v62 = vpop.permute.xlu0 %1187  ;;  %v1168_v56 = vadd.f32 %v1164_v58, %v1148_v40 }
 0x2f3   :  { %2814 = vst [vmem:[#allocation9_spill] sm:$0xff] %v2578_v52  ;;  %1045 = vrot.lane.b32.xlu1 %v2578_v52, %s1368_s17 }
 0x2f4   :  { %1303 = vrot.lane.b32.xlu0 %v2369_v37, %s1379_s4  ;;  %v2596_v46 = vpop.permute.xlu1 %1189 }
 0x2f5   :  { %v2598_v33 = vpop.permute.xlu0 %1203 }
 0x2f7   :  { %1057 = vrot.lane.b32.xlu1 %v2578_v52, %s1369_s18 }
 0x2f8   :  { %1307 = vrot.lane.b32.xlu0 %v2378_v39, %s1379_s4  ;;  %v2600_v55 = vpop.permute.xlu1 %1205 }
 0x2f9   :  { %v2602_v51 = vpop.permute.xlu0 %1207 }
 0x2fb   :  { %1305 = vrot.lane.b32.xlu1 %v2385_v20, %s1379_s4 }
 0x2fc   :  { %v2604_v42 = vpop.permute.xlu1 %1209 }
 0x2fd   :  { %v2606_v16 = vpop.permute.xlu0 %1223 }
 0x2ff   :  { %1309 = vrot.lane.b32.xlu1 %v2394_v3, %s1379_s4 }
 0x300   :  { %v2608_v8 = vpop.permute.xlu1 %1225 }
 0x301   :  { %v2610_v45 = vpop.permute.xlu0 %1227 }
 0x304   :  { %v2612_v31 = vpop.permute.xlu1 %1229 }
 0x305   :  { %v2614_v59 = vpop.permute.xlu0 %1243 }
 0x308   :  { %v2616_v9 = vpop.permute.xlu1 %1245 }
 0x309   :  { %v2618_v4 = vpop.permute.xlu0 %1247 }
 0x30c   :  { %v2620_v32 = vpop.permute.xlu1 %1249 }
 0x30d   :  { %2815 = vst [vmem:[#allocation10_spill] sm:$0xff] %v2620_v32  ;;  %v2622_v61 = vpop.permute.xlu0 %1263  ;;  %v1175_v32 = vmul.f32 %v2369_v37, %v1174_v48 }
 0x310   :  { %v2624_v21 = vpop.permute.xlu1 %1265 }
 0x311   :  { %2816 = vst [vmem:[#allocation11_spill] sm:$0xff] %v2624_v21  ;;  %v2626_v27 = vpop.permute.xlu0 %1267  ;;  %v1147_v21 = vadd.f32 %v1143_v2, %v1127_v26  ;;  %v1254_v2 = vrot.slane %v21_v1, %v1674_v63 }
 0x313   :  { %v1167_v14 = vadd.f32 %v1163_v30, %v1147_v21  ;;  %v1180_v21 = vadd.f32 %v1176_v43, %v1168_v56 }
 0x314   :  { %v2628_v17 = vpop.permute.xlu1 %1269 }
 0x315   :  { %2817 = vst [vmem:[#allocation12_spill] sm:$0xff] %v2628_v17  ;;  %v2630_v38 = vpop.permute.xlu0 %1283  ;;  %v1129_v17 = vmul.f32 %v1126_v23, %v2821_v6  ;;  %v1179_v20 = vadd.f32 %v1175_v32, %v1167_v14 }
 0x317   :  { %v1149_v12 = vadd.f32 %v1145_v35, %v1129_v17 }
 0x318   :  { %v2637_v0 = vpop.permute.xlu1 %1285 }
 0x319   :  { %2818 = vst [vmem:[#allocation13_spill] sm:$0xff] %v2637_v0  ;;  %v2639_v11 = vpop.permute.xlu0 %1287  ;;  %v1130_v0 = vmul.f32 %v1126_v23, %v2820_v7  ;;  %v1177_v7 = vmul.f32 %v2378_v39, %v1174_v48  ;;  %v1178_v23 = vmul.f32 %v2394_v3, %v1174_v48  ;;  %v1169_v22 = vadd.f32 %v1165_v13, %v1149_v12 }
 0x31a   :  { %v1238_v12 = vmul.f32 %v1234_v28, %v2612_v31 }
 0x31b   :  { %v1150_v60 = vadd.f32 %v1146_v10, %v1130_v0  ;;  %v1181_v26 = vadd.f32 %v1177_v7, %v1169_v22 }
 0x31c   :  { %v2651_v57 = vpop.permute.xlu1 %1289 }
 0x31d   :  { %2819 = vst [vmem:[#allocation14_spill] sm:$0xff] %v2651_v57  ;;  %v1194_v57 = vrot.slane %v21_v1, %v1619_v15  ;;  %v1170_v24 = vadd.f32 %v1166_v18, %v1150_v60  ;;  %v22_v15 = vld [vmem:[%s2789_s1 + $0x36] sm:$0x7] }
 0x31e   :  { %v2690_v30 = vrot.slane %v22_v15, %v1569_v50  ;;  %v1236_v50 = vmul.f32 %v1234_v28, %v2608_v8  ;;  %v2713_v7 = vrot.slane %v22_v15, %v1580_v53 }
 0x31f   :  { %v1195_v17 = vmul.f32 %v1194_v57, %v1184_v29  ;;  %v1197_v3 = vmul.f32 %v1194_v57, %v2594_v62  ;;  %v1196_v0 = vmul.f32 %v1194_v57, %v2592_v25  ;;  %v1215_v29 = vmul.f32 %v1214_v54, %v2598_v33  ;;  %v2822_v62 = vld [vmem:[#allocation8_spill] sm:$0xff] }
 0x320   :  { %v1182_v32 = vadd.f32 %v1178_v23, %v1170_v24  ;;  %v1198_v48 = vmul.f32 %v1194_v57, %v2596_v46  ;;  %v1216_v33 = vmul.f32 %v1214_v54, %v2600_v55  ;;  %v1235_v46 = vmul.f32 %v1234_v28, %v2606_v16 }
 0x321   :  { %v1199_v25 = vadd.f32 %v1195_v17, %v1179_v20  ;;  %v1201_v63 = vadd.f32 %v1197_v3, %v1181_v26  ;;  %v1200_v1 = vadd.f32 %v1196_v0, %v1180_v21  ;;  %v1237_v57 = vmul.f32 %v1234_v28, %v2610_v45  ;;  %v2824_v26 = vld [vmem:[#allocation9_spill] sm:$0xff] }
 0x322   :  { %v1202_v6 = vadd.f32 %v1198_v48, %v1182_v32  ;;  %v1255_v55 = vmul.f32 %v1254_v2, %v2614_v59  ;;  %v1256_v59 = vmul.f32 %v1254_v2, %v2616_v9 }
 0x323   :  { %v1219_v58 = vadd.f32 %v1215_v29, %v1199_v25  ;;  %v1220_v18 = vadd.f32 %v1216_v33, %v1200_v1  ;;  %v2826_v25 = vld [vmem:[#allocation11_spill] sm:$0xff] }
 0x325   :  { %v1239_v43 = vadd.f32 %v1235_v46, %v1219_v58 }
 0x326   :  { %v1040_v19 = vpop.permute.xlu0 %1039 }
 0x327   :  { %v1047_v37 = vsel %vm83_vm6, %v2524_v41, %v1040_v19  ;;  %v2680_v19 = vrot.slane %v22_v15, %v1566_v49  ;;  %v1259_v23 = vadd.f32 %v1255_v55, %v1239_v43  ;;  %v1297_v15 = vmul.f32 %v2690_v30, %v2639_v11 }
 0x328   :  { %v1063_v5 = vmax.f32 %v1047_v37, %v2524_v41 }
 0x329   :  { %v1275_v56 = vmul.f32 %v2680_v19, %v2622_v61  ;;  %v1277_v9 = vmul.f32 %v2680_v19, %v2626_v27 }
 0x32a   :  { %v1052_v44 = vpop.permute.xlu0 %1051 }
 0x32b   :  { %v1059_v39 = vsel %vm84_vm7, %v2524_v41, %v1052_v44  ;;  %v1217_v41 = vmul.f32 %v1214_v54, %v2602_v51  ;;  %v1240_v44 = vadd.f32 %v1236_v50, %v1220_v18  ;;  %v1279_v21 = vadd.f32 %v1275_v56, %v1259_v23 }
 0x32c   :  { %v2682_v35 = vmax.f32 %v1063_v5, %v1059_v39 }
 0x32d   :  { %v1042_v52 = vpop.permute.xlu1 %1041  ;;  %v1221_v16 = vadd.f32 %v1217_v41, %v1201_v63  ;;  %v1260_v20 = vadd.f32 %v1256_v59, %v1240_v44  ;;  %v1276_v41 = vmul.f32 %v2680_v19, %v2826_v25  ;;  %v1347_v63 = vld [vmem:[%s2789_s1 + $0x39] ss:$0 sm:$0xff] }
 0x32e   :  { %v1048_v34 = vsel %vm83_vm6, %v2822_v62, %v1042_v52  ;;  %v1218_v52 = vmul.f32 %v1214_v54, %v2604_v42  ;;  %v1075_v40 = vrot.slane %v2682_v35, 7  ;;  %v1257_v42 = vmul.f32 %v1254_v2, %v2618_v4 }
 0x32f   :  { %v1064_v51 = vmax.f32 %v1048_v34, %v2822_v62  ;;  %v1241_v14 = vadd.f32 %v1237_v57, %v1221_v16  ;;  %v1295_v4 = vmul.f32 %v2690_v30, %v2630_v38  ;;  %v1095_v38 = vrot.slane %v2682_v35, 1 }
 0x330   :  { %v1222_v8 = vadd.f32 %v1218_v52, %v1202_v6  ;;  %v1086_v31 = vsel %vm101_vm0, %v2682_v35, %v1075_v40  ;;  %v1280_v59 = vadd.f32 %v1276_v41, %v1260_v20 }
 0x331   :  { %v1054_v10 = vpop.permute.xlu1 %1053  ;;  %v1261_v54 = vadd.f32 %v1257_v42, %v1241_v14  ;;  %v1087_v27 = vsel %vm1450_vm1, %v2682_v35, %v1086_v31  ;;  %v2830_v14 = vld [vmem:[#allocation14_spill] sm:$0xff] }
 0x332   :  { %v1060_v49 = vsel %vm84_vm7, %v2822_v62, %v1054_v10  ;;  %v1242_v37 = vadd.f32 %v1238_v12, %v1222_v8  ;;  %v1299_v10 = vadd.f32 %v1295_v4, %v1279_v21  ;;  %v2825_v62 = vld [vmem:[#allocation10_spill] sm:$0xff]  ;;  %v1091_v1 = vmax.f32 %v1087_v27, %v2682_v35 }
 0x333   :  { %v2702_v60 = vmax.f32 %v1064_v51, %v1060_v49  ;;  %v1281_v32 = vadd.f32 %v1277_v9, %v1261_v54  ;;  %v1258_v34 = vmul.f32 %v1254_v2, %v2825_v62  ;;  %v2827_v49 = vld [vmem:[#allocation12_spill] sm:$0xff]  ;;  %v2828_v2 = vld [vmem:[#allocation13_spill] sm:$0xff]  ;;  %v1298_v8 = vmul.f32 %v2690_v30, %v2830_v14 }
 0x334   :  { %v1278_v58 = vmul.f32 %v2680_v19, %v2827_v49  ;;  %v1296_v6 = vmul.f32 %v2690_v30, %v2828_v2 }
 0x335   :  { %v1096_v61 = vrot.slane %v2702_v60, 1  ;;  %v1076_v0 = vrot.slane %v2702_v60, 7  ;;  %v1301_v46 = vadd.f32 %v1297_v15, %v1281_v32  ;;  %v1262_v12 = vadd.f32 %v1258_v34, %v1242_v37 }
 0x336   :  { %v1300_v31 = vadd.f32 %v1296_v6, %v1280_v59 }
 0x337   :  { %v1097_v11 = vsel %vm118_vm3, %v1095_v38, %v1096_v61  ;;  %v1077_v56 = vsel %vm101_vm0, %v1075_v40, %v1076_v0  ;;  %v1282_v54 = vadd.f32 %v1278_v58, %v1262_v12 }
 0x338   :  { %v1111_v55 = vmax.f32 %v1091_v1, %v1097_v11  ;;  %v1092_v30 = vmax.f32 %v1077_v56, %v2702_v60 }
 0x339   :  { %v1302_v15 = vadd.f32 %v1298_v8, %v1282_v54 }
 0x35e   :  { %v1044_v13 = vpop.permute.xlu0 %1043 }
 0x35f   :  { %v1049_v45 = vsel %vm83_vm6, %v2570_v36, %v1044_v13 }
 0x360   :  { %v1065_v22 = vmax.f32 %v1049_v45, %v2570_v36 }
 0x362   :  { %v1056_v24 = vpop.permute.xlu0 %1055 }
 0x363   :  { %v1061_v53 = vsel %vm84_vm7, %v2570_v36, %v1056_v24 }
 0x364   :  { %v1069_v17 = vmax.f32 %v1065_v22, %v1061_v53 }
 0x365   :  { %v1046_v3 = vpop.permute.xlu1 %1045 }
 0x366   :  { %v1078_v28 = vrot.slane %v1069_v17, 7  ;;  %v1098_v5 = vrot.slane %v1069_v17, 1  ;;  %v1304_v36 = vpop.permute.xlu0 %1303  ;;  %v1050_v29 = vsel %vm83_vm6, %v2824_v26, %v1046_v3 }
 0x367   :  { %v1315_v48 = vmul.f32 %v2713_v7, %v1304_v36  ;;  %v1066_v52 = vmax.f32 %v1050_v29, %v2824_v26 }
 0x368   :  { %v1079_v33 = vsel %vm101_vm0, %v1076_v0, %v1078_v28  ;;  %v1099_v16 = vsel %vm118_vm3, %v1096_v61, %v1098_v5 }
 0x369   :  { %v1319_v57 = vadd.f32 %v1315_v48, %v1299_v10  ;;  %v1058_v51 = vpop.permute.xlu1 %1057  ;;  %v1089_v45 = vsel %vm1461_vm2, %v1069_v17, %v1079_v33  ;;  %v1108_v61 = vsel %vm1500_vm4, %v2702_v60, %v1099_v16 }
 0x36a   :  { %v1308_v50 = vpop.permute.xlu0 %1307  ;;  %v1062_v13 = vsel %vm84_vm7, %v2824_v26, %v1058_v51  ;;  %v1093_v9 = vmax.f32 %v1089_v45, %v1069_v17  ;;  %v1112_v39 = vmax.f32 %v1092_v30, %v1108_v61 }
 0x36b   :  { %v1327_v43 = vadd.f32 %v1347_v63, %v1319_v57  ;;  %v1317_v19 = vmul.f32 %v2713_v7, %v1308_v50  ;;  %v1070_v42 = vmax.f32 %v1066_v52, %v1062_v13 }
 0x36d   :  { %v1331_v47 = vadd.f32 %v1327_v43, %v1111_v55  ;;  %v1321_v23 = vadd.f32 %v1317_v19, %v1301_v46  ;;  %v1080_v44 = vrot.slane %v1070_v42, 7  ;;  %v1100_v22 = vrot.slane %v1070_v42, 1  ;;  %v1306_v24 = vpop.permute.xlu1 %1305 }
 0x36e   :  { %v1316_v53 = vmul.f32 %v2713_v7, %v1306_v24 }
 0x36f   :  { %1335 = vst [vmem:[%s2790_s2] sm:$0xff] %v1331_v47  ;;  %v1101_v35 = vsel %vm118_vm3, %v1098_v5, %v1100_v22  ;;  %v1081_v40 = vsel %vm101_vm0, %v1078_v28, %v1080_v44  ;;  %v1329_v37 = vadd.f32 %v1347_v63, %v1321_v23  ;;  %v1106_v21 = vsel %vm118_vm3, %v1100_v22, %v1070_v42 }
 0x370   :  { %v1113_v20 = vmax.f32 %v1093_v9, %v1101_v35  ;;  %v1320_v17 = vadd.f32 %v1316_v53, %v1300_v31  ;;  %v1094_v0 = vmax.f32 %v1081_v40, %v1070_v42  ;;  %v1110_v5 = vsel %vm1518_vm5, %v1070_v42, %v1106_v21 }
 0x371   :  { %v1310_v27 = vpop.permute.xlu1 %1309 }
 0x372   :  { %v1333_v38 = vadd.f32 %v1329_v37, %v1113_v20  ;;  %v1328_v3 = vadd.f32 %v1347_v63, %v1320_v17  ;;  %v1318_v36 = vmul.f32 %v2713_v7, %v1310_v27  ;;  %v1114_v29 = vmax.f32 %v1094_v0, %v1110_v5 }
 0x374   :  { %1337 = vst [vmem:[%s2790_s2 + $0x10] sm:$0xff] %v1333_v38  ;;  %v1332_v60 = vadd.f32 %v1328_v3, %v1112_v39  ;;  %v1322_v28 = vadd.f32 %v1318_v36, %v1302_v15 }
 0x376   :  { %1336 = vst [vmem:[%s2790_s2 + $0x8] sm:$0xff] %v1332_v60  ;;  %v1330_v32 = vadd.f32 %v1347_v63, %v1322_v28 }
 0x378   :  { %v1334_v10 = vadd.f32 %v1330_v32, %v1114_v29 }
 0x37a   :  { %1338 = vst [vmem:[%s2790_s2 + $0x18] sm:$0xff] %v1334_v10 }

</bundles_post_ra>
